<compile_context>
chip_gen: v5e
topology: v5e:2x2
jax: 0.10.0
libtpu: 0.0.40
codegen_flags: <defaults>
</compile_context>

<pallas_src>
import functools

import jax
import jax.numpy as jnp
from jax.experimental import pallas as pl
from jax.experimental.pallas import tpu as pltpu

CPAD = 128                                 # lane-dense output-channel padding
_VMEM = pl.BlockSpec(memory_space=pltpu.MemorySpace.VMEM)
_VMEM_LIMIT = 48 * 1024 * 1024             # < v7x 64 MiB physical, > defaults
_NOGRID_PARAMS = pltpu.CompilerParams(vmem_limit_bytes=_VMEM_LIMIT)


# ------------------------------ Pallas kernels ------------------------------

def _mm_bias_lrelu_kernel(p_ref, w_ref, b_ref, o_ref):
    # (tm,K)bf16 @ (K,128)bf16 -> f32 acc, + bias, LeakyReLU(0.2), store bf16.
    acc = jnp.dot(p_ref[...], w_ref[...], preferred_element_type=jnp.float32)
    acc = acc + b_ref[...]
    o_ref[...] = jnp.where(acc > 0, acc, 0.2 * acc).astype(o_ref.dtype)


def _mm_bn_lrelu_tiled_kernel(p_ref, w_ref, gamma_ref, beta_ref, o_ref,
                              sum_ref, sumsq_ref, scale_ref, shift_ref,
                              *, inv_m):
    # Two-phase grid (phase, m_tile):
    #   phase 0: accumulate per-channel sum / sumsq of conv output (exact
    #            PyTorch training-mode batch stats, biased variance).
    #   phase 1: recompute tile matmul, apply folded BN scale+shift + LReLU.
    # No conv bias: it is cancelled by the BN mean subtraction.
    phase = pl.program_id(0)
    i = pl.program_id(1)
    acc = jnp.dot(p_ref[...], w_ref[...], preferred_element_type=jnp.float32)

    @pl.when(phase == 0)
    def _():
        @pl.when(i == 0)
        def _():
            sum_ref[...] = jnp.zeros_like(sum_ref)
            sumsq_ref[...] = jnp.zeros_like(sumsq_ref)
        sum_ref[...] = sum_ref[...] + jnp.sum(acc, axis=0, keepdims=True)
        sumsq_ref[...] = sumsq_ref[...] + jnp.sum(acc * acc, axis=0, keepdims=True)

    @pl.when(phase == 1)
    def _():
        @pl.when(i == 0)
        def _():
            mean = sum_ref[...] * inv_m
            var = sumsq_ref[...] * inv_m - mean * mean
            s = gamma_ref[...] * jax.lax.rsqrt(var + 1e-5)
            scale_ref[...] = s
            shift_ref[...] = beta_ref[...] - mean * s
        y = acc * scale_ref[...] + shift_ref[...]
        o_ref[...] = jnp.where(y > 0, y, 0.2 * y).astype(o_ref.dtype)


def _head_kernel(p_ref, w_ref, gamma_ref, beta_ref, w5t_ref, sel_ref, b5_ref,
                 o_ref):
    # conv4 (matmul + BN + LeakyReLU) fused with conv5 (4x4/s1/p0 on the 4x4
    # map == per-image dot with the whole activation block) + bias; no sigmoid
    # (WGAN critic).  M = B*16 is tiny, so a single block covers everything.
    acc = jnp.dot(p_ref[...], w_ref[...], preferred_element_type=jnp.float32)
    mean = jnp.mean(acc, axis=0, keepdims=True)
    var = jnp.mean(acc * acc, axis=0, keepdims=True) - mean * mean
    s = gamma_ref[...] * jax.lax.rsqrt(var + 1e-5)
    t = beta_ref[...] - mean * s
    y = acc * s + t
    y = jnp.where(y > 0, y, 0.2 * y)                        # (B*16, 128) f32
    # conv5: lane reduction first (XLU, cheap), then a tiny (B, B*16) x
    # (B*16, 1) selection matmul groups the 16 spatial rows of each image.
    prod = y * w5t_ref[...]                                 # (B*16, 128)
    row = jnp.sum(prod, axis=1, keepdims=True)              # (B*16, 1)
    o_ref[...] = (jnp.dot(sel_ref[...], row,
                          preferred_element_type=jnp.float32) + b5_ref[...])


# ------------------------------ Pallas wrappers ------------------------------

def _bytes(*arrs):
    return sum(int(a.size) * a.dtype.itemsize for a in arrs)


def _pick_tile(m, cap=512):
    for t in (cap, 1024, 512, 256, 128, 64, 32, 16, 8):
        if t <= cap and t <= m and m % t == 0:
            return t
    return m


def conv_bias_lrelu(patches, w, b, *, n_real):
    M, K = patches.shape
    N = w.shape[1]
    tile_m = _pick_tile(M, cap=2048 if M >= 8192 else 512)
    gm = M // tile_m
    cost = pl.CostEstimate(flops=2 * M * K * n_real, transcendentals=0,
                           bytes_accessed=_bytes(patches, w, b) + M * N * 2)
    return pl.pallas_call(
        _mm_bias_lrelu_kernel,
        out_shape=jax.ShapeDtypeStruct((M, N), jnp.bfloat16),
        grid=(gm,),
        in_specs=[pl.BlockSpec((tile_m, K), lambda i: (i, 0)),
                  pl.BlockSpec((K, N), lambda i: (0, 0)),
                  pl.BlockSpec((1, N), lambda i: (0, 0))],
        out_specs=pl.BlockSpec((tile_m, N), lambda i: (i, 0)),
        compiler_params=pltpu.CompilerParams(
            dimension_semantics=("parallel",),
            vmem_limit_bytes=_VMEM_LIMIT),
        cost_estimate=cost,
    )(patches, w, b)


def conv_bn_lrelu(patches, w, gamma, beta, *, n_real):
    # Two-phase M-tiled BatchNorm conv block.  Both grid axes are "arbitrary":
    # phase order must be sequential, and the stats scratch must see every
    # M-tile (a megacore-parallel M axis would split the accumulators).
    M, K = patches.shape
    N = w.shape[1]
    tile_m = _pick_tile(M, cap=256)
    gm = M // tile_m
    kernel = functools.partial(_mm_bn_lrelu_tiled_kernel, inv_m=1.0 / M)
    cost = pl.CostEstimate(
        flops=2 * (2 * M * K * n_real), transcendentals=0,
        bytes_accessed=2 * _bytes(patches) + _bytes(w, gamma, beta) + M * N * 2)
    return pl.pallas_call(
        kernel,
        out_shape=jax.ShapeDtypeStruct((M, N), jnp.bfloat16),
        grid=(2, gm),
        in_specs=[pl.BlockSpec((tile_m, K), lambda p, i: (i, 0)),
                  pl.BlockSpec((K, N), lambda p, i: (0, 0)),
                  pl.BlockSpec((1, N), lambda p, i: (0, 0)),
                  pl.BlockSpec((1, N), lambda p, i: (0, 0))],
        # Phase 0 never writes the output; keep its block index pinned at 0 so
        # no garbage block is ever flushed, phase 1 streams blocks 0..gm-1.
        out_specs=pl.BlockSpec((tile_m, N), lambda p, i: (p * i, 0)),
        scratch_shapes=[pltpu.VMEM((1, N), jnp.float32)] * 4,
        compiler_params=pltpu.CompilerParams(
            dimension_semantics=("arbitrary", "arbitrary"),
            vmem_limit_bytes=_VMEM_LIMIT),
        cost_estimate=cost,
    )(patches, w, gamma, beta)


def conv_bn_lrelu_head(patches, w, gamma, beta, w5t, sel, b5, *, n_real):
    # TODO(synk): for large batch, M-tile this head like conv_bn_lrelu and
    # accumulate the per-image conv5 partial sums across tiles.
    M, K = patches.shape
    B = sel.shape[0]
    cost = pl.CostEstimate(
        flops=2 * M * K * n_real, transcendentals=0,
        bytes_accessed=_bytes(patches, w, gamma, beta, w5t, sel, b5) + B * 4)
    return pl.pallas_call(
        _head_kernel,
        out_shape=jax.ShapeDtypeStruct((B, 1), jnp.float32),
        in_specs=[_VMEM] * 7,
        out_specs=_VMEM,
        compiler_params=_NOGRID_PARAMS,
        cost_estimate=cost,
    )(patches, w, gamma, beta, w5t, sel, b5)


# ------------------------------ JAX glue (im2col) ------------------------------

def im2col(x, k, s, p):
    """x: (B, H, W, C) NHWC -> (B*Ho*Wo, k*k*C), flatten order (kh, kw, c)."""
    # TODO(synk): fuse im2col into the kernels (shifted-slice matmuls on a
    # resident NHWC tile) to drop the materialized patch arrays entirely.
    B, H, W, C = x.shape
    xp = jnp.pad(x, ((0, 0), (p, p), (p, p), (0, 0))) if p else x
    Ho = (H + 2 * p - k) // s + 1
    Wo = (W + 2 * p - k) // s + 1
    cols = []
    for ki in range(k):
        for kj in range(k):
            cols.append(jax.lax.slice(
                xp, (0, ki, kj, 0),
                (B, ki + (Ho - 1) * s + 1, kj + (Wo - 1) * s + 1, C),
                (1, s, s, 1)))                        # (B, Ho, Wo, C)
    pat = jnp.concatenate(cols, axis=-1)              # (B, Ho, Wo, k*k*C)
    return pat.reshape(B * Ho * Wo, k * k * C), Ho, Wo


# ------------------------------ Parameters ------------------------------

def _conv_weight(key, cout, cin, k):
    # PyTorch (Cout, Cin, kH, kW) -> (kH, kW, Cin, Cout); contraction dim is
    # the REAL k*k*cin (no padding); only output channels are padded to 128.
    w = jax.random.normal(key, (cout, cin, k, k), jnp.float32) * 0.02
    w = jnp.transpose(w, (2, 3, 1, 0))
    w = jnp.pad(w, ((0, 0), (0, 0), (0, 0), (0, CPAD - cout)))
    return w.reshape(k * k * cin, CPAD).astype(jnp.bfloat16)


def init_params(key, nc=1, hc=8, batch=2):
    keys = jax.random.split(key, 8)
    params = {}
    # conv1 (bias kept: no BN follows it).
    params["w1"] = _conv_weight(keys[0], hc, nc, 4)
    b1 = jax.random.normal(keys[1], (hc,), jnp.float32) * 0.02
    params["b1"] = jnp.pad(b1, (0, CPAD - hc)).reshape(1, CPAD)
    # Blocks 2-4: conv (bias dropped -- inert under BN) + BN params.
    for idx, (cin, cout) in enumerate(((hc, hc * 2), (hc * 2, hc * 4),
                                       (hc * 4, hc * 8)), start=2):
        params[f"w{idx}"] = _conv_weight(keys[idx], cout, cin, 4)
        params[f"gamma{idx}"] = jnp.pad(jnp.ones((cout,), jnp.float32),
                                        (0, CPAD - cout)).reshape(1, CPAD)
        params[f"beta{idx}"] = jnp.zeros((1, CPAD), jnp.float32)
    # conv5: (1, hc*8, 4, 4) -> rows (kh*4+kw), cols cin, padded to 128 lanes;
    # head constants (tiled weight + per-image row selector) built once here.
    w5 = jax.random.normal(keys[5], (1, hc * 8, 4, 4), jnp.float32) * 0.02
    w5 = jnp.transpose(w5, (2, 3, 1, 0)).reshape(16, hc * 8)
    w5 = jnp.pad(w5, ((0, 0), (0, CPAD - hc * 8)))
    params["w5t"] = jnp.tile(w5, (batch, 1))                          # (B*16,128)
    params["sel"] = jnp.repeat(jnp.eye(batch, dtype=jnp.float32), 16, axis=1)
    params["b5"] = jax.random.normal(keys[6], (1, 1), jnp.float32) * 0.02
    return params


# ------------------------------ Forward ------------------------------

def critic_forward(x_nchw, params):
    x = jnp.transpose(x_nchw, (0, 2, 3, 1)).astype(jnp.bfloat16)      # NCHW->NHWC
    B = x.shape[0]
    hc = params["w2"].shape[0] // 16           # k*k*cin of conv2 == 16*hc
    assert params["sel"].shape[0] == B, "params built for a different batch"

    # conv(nc -> hc, 4, 2, 1) + LeakyReLU(0.2)
    p, Ho, Wo = im2col(x, 4, 2, 1)
    x = conv_bias_lrelu(p, params["w1"], params["b1"], n_real=hc)
    x = x.reshape(B, Ho, Wo, CPAD)[..., :hc]          # drop lane padding

    # blocks 2 & 3: conv(4,2,1) + BatchNorm (batch stats) + LeakyReLU(0.2)
    for i, cout in ((2, 2 * hc), (3, 4 * hc)):
        p, Ho, Wo = im2col(x, 4, 2, 1)
        x = conv_bn_lrelu(p, params[f"w{i}"], params[f"gamma{i}"],
                          params[f"beta{i}"], n_real=cout)
        x = x.reshape(B, Ho, Wo, CPAD)[..., :cout]

    # block 4 fused with the final conv(hc*8 -> 1, 4, 1, 0); no sigmoid (WGAN).
    p, Ho, Wo = im2col(x, 4, 2, 1)
    assert Ho == 4 and Wo == 4, (Ho, Wo)   # conv5's 4x4/s1/p0 window == full map
    out = conv_bn_lrelu_head(p, params["w4"], params["gamma4"], params["beta4"],
                             params["w5t"], params["sel"], params["b5"],
                             n_real=8 * hc)
    return out                                                        # (B, 1)


# ------------------------------ Main ------------------------------

if __name__ == "__main__":
    key = jax.random.PRNGKey(0)
    kx, kp = jax.random.split(key)

    # The critic needs 64x64 spatial input (64->32->16->8->4->1x1); keep batch
    # and hidden_channels small.
    B, NC, HC, S = 2, 1, 8, 64
    x = jax.random.normal(kx, (B, NC, S, S), jnp.float32)   # NCHW, like PyTorch
    params = init_params(kp, nc=NC, hc=HC, batch=B)

    out = jax.jit(critic_forward)(x, params)
    out = jax.block_until_ready(out)

    assert out.shape == (B, 1), out.shape                    # .view(len(x), -1)
    assert bool(jnp.all(jnp.isfinite(out)))
    print("KERNEL_OK")
</pallas_src>

<mosaic_0001>
module attributes {stable_mosaic.version = 11 : i64} {
  func.func @_mm_bias_lrelu_kernel(%arg0: i32, %arg1: memref<512x16xbf16, #tpu.memory_space<vmem>>, %arg2: memref<16x128xbf16, #tpu.memory_space<vmem>>, %arg3: memref<1x128xf32, #tpu.memory_space<vmem>>, %arg4: memref<512x128xbf16, #tpu.memory_space<vmem>>) attributes {dimension_semantics = [#tpu.dimension_semantics<parallel>], iteration_bounds = array<i64: 4>, scalar_prefetch = 0 : i64, scratch_operands = 0 : i64, tpu.core_type = #tpu.core_type<tc>, window_params = [{transform_indices = @transform_0, window_bounds = array<i64: 512, 16>}, {pipeline_mode = #tpu.pipeline_mode<synchronous>, transform_indices = @transform_1, window_bounds = array<i64: 16, 128>}, {pipeline_mode = #tpu.pipeline_mode<synchronous>, transform_indices = @transform_2, window_bounds = array<i64: 1, 128>}, {transform_indices = @transform_3, window_bounds = array<i64: 512, 128>}]} {
    %c0 = arith.constant 0 : index
    %c0_0 = arith.constant 0 : index
    %0 = vector.load %arg1[%c0, %c0_0] : memref<512x16xbf16, #tpu.memory_space<vmem>>, vector<512x16xbf16>
    %c0_1 = arith.constant 0 : index
    %c0_2 = arith.constant 0 : index
    %1 = vector.load %arg2[%c0_1, %c0_2] : memref<16x128xbf16, #tpu.memory_space<vmem>>, vector<16x128xbf16>
    %cst = arith.constant dense<0.000000e+00> : vector<512x128xf32>
    %2 = tpu.matmul %0, %1, %cst {dimension_numbers = #tpu.dot_dimension_numbers<[1], [0], [0], [1], [0, 0, 1, 1], [], []>} : vector<512x16xbf16>, vector<16x128xbf16>, vector<512x128xf32> -> vector<512x128xf32>
    %c0_3 = arith.constant 0 : index
    %c0_4 = arith.constant 0 : index
    %3 = vector.load %arg3[%c0_3, %c0_4] : memref<1x128xf32, #tpu.memory_space<vmem>>, vector<1x128xf32>
    %4 = vector.broadcast %3 : vector<1x128xf32> to vector<512x128xf32>
    %5 = arith.addf %2, %4 : vector<512x128xf32>
    %cst_5 = arith.constant 0.000000e+00 : f32
    %6 = vector.broadcast %cst_5 : f32 to vector<512x128xf32>
    %7 = arith.cmpf ogt, %5, %6 : vector<512x128xf32>
    %cst_6 = arith.constant 2.000000e-01 : f32
    %8 = vector.broadcast %cst_6 : f32 to vector<512x128xf32>
    %9 = arith.mulf %8, %5 : vector<512x128xf32>
    %10 = arith.select %7, %5, %9 : vector<512x128xi1>, vector<512x128xf32>
    %11 = arith.truncf %10 : vector<512x128xf32> to vector<512x128xbf16>
    %c0_7 = arith.constant 0 : index
    %c0_8 = arith.constant 0 : index
    %12 = vector.load %arg4[%c0_7, %c0_8] : memref<512x128xbf16, #tpu.memory_space<vmem>>, vector<512x128xbf16>
    tpu.vector_store %arg4[%c0_7, %c0_8], %11 {strides = array<i32>} : memref<512x128xbf16, #tpu.memory_space<vmem>>, vector<512x128xbf16>,
    return
  }
  func.func @transform_0(%arg0: i32) -> (i32, i32) {
    %c0_i32 = arith.constant 0 : i32
    %c0_i32_0 = arith.constant 0 : i32
    return %arg0, %c0_i32 : i32, i32
  }
  func.func @transform_1(%arg0: i32) -> (i32, i32) {
    %c0_i32 = arith.constant 0 : i32
    %c0_i32_0 = arith.constant 0 : i32
    %c0_i32_1 = arith.constant 0 : i32
    return %c0_i32, %c0_i32_0 : i32, i32
  }
  func.func @transform_2(%arg0: i32) -> (i32, i32) {
    %c0_i32 = arith.constant 0 : i32
    %c0_i32_0 = arith.constant 0 : i32
    %c0_i32_1 = arith.constant 0 : i32
    return %c0_i32, %c0_i32_0 : i32, i32
  }
  func.func @transform_3(%arg0: i32) -> (i32, i32) {
    %c0_i32 = arith.constant 0 : i32
    %c0_i32_0 = arith.constant 0 : i32
    return %arg0, %c0_i32 : i32, i32
  }
}

module attributes {stable_mosaic.version = 11 : i64} {
  func.func @_mm_bn_lrelu_tiled_kernel(%arg0: i32, %arg1: i32, %arg2: memref<256x128xbf16, #tpu.memory_space<vmem>>, %arg3: memref<128x128xbf16, #tpu.memory_space<vmem>>, %arg4: memref<1x128xf32, #tpu.memory_space<vmem>>, %arg5: memref<1x128xf32, #tpu.memory_space<vmem>>, %arg6: memref<256x128xbf16, #tpu.memory_space<vmem>>, %arg7: memref<1x128xf32, #tpu.memory_space<vmem>>, %arg8: memref<1x128xf32, #tpu.memory_space<vmem>>, %arg9: memref<1x128xf32, #tpu.memory_space<vmem>>, %arg10: memref<1x128xf32, #tpu.memory_space<vmem>>) attributes {dimension_semantics = [#tpu.dimension_semantics<arbitrary>, #tpu.dimension_semantics<arbitrary>], iteration_bounds = array<i64: 2, 2>, scalar_prefetch = 0 : i64, scratch_operands = 4 : i64, tpu.core_type = #tpu.core_type<tc>, window_params = [{transform_indices = @transform_0, window_bounds = array<i64: 256, 128>}, {pipeline_mode = #tpu.pipeline_mode<synchronous>, transform_indices = @transform_1, window_bounds = array<i64: 128, 128>}, {pipeline_mode = #tpu.pipeline_mode<synchronous>, transform_indices = @transform_2, window_bounds = array<i64: 1, 128>}, {pipeline_mode = #tpu.pipeline_mode<synchronous>, transform_indices = @transform_3, window_bounds = array<i64: 1, 128>}, {transform_indices = @transform_4, window_bounds = array<i64: 256, 128>}]} {
    %c0 = arith.constant 0 : index
    %c0_0 = arith.constant 0 : index
    %0 = vector.load %arg2[%c0, %c0_0] : memref<256x128xbf16, #tpu.memory_space<vmem>>, vector<256x128xbf16>
    %c0_1 = arith.constant 0 : index
    %c0_2 = arith.constant 0 : index
    %1 = vector.load %arg3[%c0_1, %c0_2] : memref<128x128xbf16, #tpu.memory_space<vmem>>, vector<128x128xbf16>
    %cst = arith.constant dense<0.000000e+00> : vector<256x128xf32>
    %2 = tpu.matmul %0, %1, %cst {dimension_numbers = #tpu.dot_dimension_numbers<[1], [0], [0], [1], [0, 0, 1, 1], [], []>} : vector<256x128xbf16>, vector<128x128xbf16>, vector<256x128xf32> -> vector<256x128xf32>
    %c0_i32 = arith.constant 0 : i32
    %3 = arith.cmpi eq, %arg0, %c0_i32 : i32
    %4 = arith.extui %3 : i1 to i32
    %c0_i32_3 = arith.constant 0 : i32
    %5 = arith.cmpi ne, %4, %c0_i32_3 : i32
    scf.if %5 {
      %c0_i32_5 = arith.constant 0 : i32
      %9 = arith.cmpi eq, %arg1, %c0_i32_5 : i32
      %10 = arith.extui %9 : i1 to i32
      %c0_i32_6 = arith.constant 0 : i32
      %11 = arith.cmpi ne, %10, %c0_i32_6 : i32
      scf.if %11 {
        %cst_17 = arith.constant 0.000000e+00 : f32
        %23 = vector.broadcast %cst_17 : f32 to vector<1x128xf32>
        %c0_18 = arith.constant 0 : index
        %c0_19 = arith.constant 0 : index
        %24 = vector.load %arg7[%c0_18, %c0_19] : memref<1x128xf32, #tpu.memory_space<vmem>>, vector<1x128xf32>
        tpu.vector_store %arg7[%c0_18, %c0_19], %23 {strides = array<i32>} : memref<1x128xf32, #tpu.memory_space<vmem>>, vector<1x128xf32>,
        %cst_20 = arith.constant 0.000000e+00 : f32
        %25 = vector.broadcast %cst_20 : f32 to vector<1x128xf32>
        %c0_21 = arith.constant 0 : index
        %c0_22 = arith.constant 0 : index
        %26 = vector.load %arg8[%c0_21, %c0_22] : memref<1x128xf32, #tpu.memory_space<vmem>>, vector<1x128xf32>
        tpu.vector_store %arg8[%c0_21, %c0_22], %25 {strides = array<i32>} : memref<1x128xf32, #tpu.memory_space<vmem>>, vector<1x128xf32>,
      } else {
      }
      %c0_7 = arith.constant 0 : index
      %c0_8 = arith.constant 0 : index
      %12 = vector.load %arg7[%c0_7, %c0_8] : memref<1x128xf32, #tpu.memory_space<vmem>>, vector<1x128xf32>
      %cst_9 = arith.constant dense<0.000000e+00> : vector<128xf32>
      %13 = vector.multi_reduction <add>, %2, %cst_9 [0] : vector<256x128xf32> to vector<128xf32>
      %14 = vector.shape_cast %13 : vector<128xf32> to vector<1x128xf32>
      %15 = arith.addf %12, %14 : vector<1x128xf32>
      %c0_10 = arith.constant 0 : index
      %c0_11 = arith.constant 0 : index
      %16 = vector.load %arg7[%c0_10, %c0_11] : memref<1x128xf32, #tpu.memory_space<vmem>>, vector<1x128xf32>
      tpu.vector_store %arg7[%c0_10, %c0_11], %15 {strides = array<i32>} : memref<1x128xf32, #tpu.memory_space<vmem>>, vector<1x128xf32>,
      %c0_12 = arith.constant 0 : index
      %c0_13 = arith.constant 0 : index
      %17 = vector.load %arg8[%c0_12, %c0_13] : memref<1x128xf32, #tpu.memory_space<vmem>>, vector<1x128xf32>
      %18 = arith.mulf %2, %2 : vector<256x128xf32>
      %cst_14 = arith.constant dense<0.000000e+00> : vector<128xf32>
      %19 = vector.multi_reduction <add>, %18, %cst_14 [0] : vector<256x128xf32> to vector<128xf32>
      %20 = vector.shape_cast %19 : vector<128xf32> to vector<1x128xf32>
      %21 = arith.addf %17, %20 : vector<1x128xf32>
      %c0_15 = arith.constant 0 : index
      %c0_16 = arith.constant 0 : index
      %22 = vector.load %arg8[%c0_15, %c0_16] : memref<1x128xf32, #tpu.memory_space<vmem>>, vector<1x128xf32>
      tpu.vector_store %arg8[%c0_15, %c0_16], %21 {strides = array<i32>} : memref<1x128xf32, #tpu.memory_space<vmem>>, vector<1x128xf32>,
    } else {
    }
    %c1_i32 = arith.constant 1 : i32
    %6 = arith.cmpi eq, %arg0, %c1_i32 : i32
    %7 = arith.extui %6 : i1 to i32
    %c0_i32_4 = arith.constant 0 : i32
    %8 = arith.cmpi ne, %7, %c0_i32_4 : i32
    scf.if %8 {
      %c0_i32_5 = arith.constant 0 : i32
      %9 = arith.cmpi eq, %arg1, %c0_i32_5 : i32
      %10 = arith.extui %9 : i1 to i32
      %c0_i32_6 = arith.constant 0 : i32
      %11 = arith.cmpi ne, %10, %c0_i32_6 : i32
      scf.if %11 {
        %c0_15 = arith.constant 0 : index
        %c0_16 = arith.constant 0 : index
        %25 = vector.load %arg7[%c0_15, %c0_16] : memref<1x128xf32, #tpu.memory_space<vmem>>, vector<1x128xf32>
        %cst_17 = arith.constant 0.001953125 : f32
        %26 = vector.broadcast %cst_17 : f32 to vector<1x128xf32>
        %27 = arith.mulf %25, %26 : vector<1x128xf32>
        %c0_18 = arith.constant 0 : index
        %c0_19 = arith.constant 0 : index
        %28 = vector.load %arg8[%c0_18, %c0_19] : memref<1x128xf32, #tpu.memory_space<vmem>>, vector<1x128xf32>
        %cst_20 = arith.constant 0.001953125 : f32
        %29 = vector.broadcast %cst_20 : f32 to vector<1x128xf32>
        %30 = arith.mulf %28, %29 : vector<1x128xf32>
        %31 = arith.mulf %27, %27 : vector<1x128xf32>
        %32 = arith.subf %30, %31 : vector<1x128xf32>
        %c0_21 = arith.constant 0 : index
        %c0_22 = arith.constant 0 : index
        %33 = vector.load %arg4[%c0_21, %c0_22] : memref<1x128xf32, #tpu.memory_space<vmem>>, vector<1x128xf32>
        %cst_23 = arith.constant 9.99999974E-6 : f32
        %34 = vector.broadcast %cst_23 : f32 to vector<1x128xf32>
        %35 = arith.addf %32, %34 : vector<1x128xf32>
        %36 = math.rsqrt %35 : vector<1x128xf32>
        %37 = arith.mulf %33, %36 : vector<1x128xf32>
        %c0_24 = arith.constant 0 : index
        %c0_25 = arith.constant 0 : index
        %38 = vector.load %arg9[%c0_24, %c0_25] : memref<1x128xf32, #tpu.memory_space<vmem>>, vector<1x128xf32>
        tpu.vector_store %arg9[%c0_24, %c0_25], %37 {strides = array<i32>} : memref<1x128xf32, #tpu.memory_space<vmem>>, vector<1x128xf32>,
        %c0_26 = arith.constant 0 : index
        %c0_27 = arith.constant 0 : index
        %39 = vector.load %arg5[%c0_26, %c0_27] : memref<1x128xf32, #tpu.memory_space<vmem>>, vector<1x128xf32>
        %40 = arith.mulf %27, %37 : vector<1x128xf32>
        %41 = arith.subf %39, %40 : vector<1x128xf32>
        %c0_28 = arith.constant 0 : index
        %c0_29 = arith.constant 0 : index
        %42 = vector.load %arg10[%c0_28, %c0_29] : memref<1x128xf32, #tpu.memory_space<vmem>>, vector<1x128xf32>
        tpu.vector_store %arg10[%c0_28, %c0_29], %41 {strides = array<i32>} : memref<1x128xf32, #tpu.memory_space<vmem>>, vector<1x128xf32>,
      } else {
      }
      %c0_7 = arith.constant 0 : index
      %c0_8 = arith.constant 0 : index
      %12 = vector.load %arg9[%c0_7, %c0_8] : memref<1x128xf32, #tpu.memory_space<vmem>>, vector<1x128xf32>
      %13 = vector.broadcast %12 : vector<1x128xf32> to vector<256x128xf32>
      %14 = arith.mulf %2, %13 : vector<256x128xf32>
      %c0_9 = arith.constant 0 : index
      %c0_10 = arith.constant 0 : index
      %15 = vector.load %arg10[%c0_9, %c0_10] : memref<1x128xf32, #tpu.memory_space<vmem>>, vector<1x128xf32>
      %16 = vector.broadcast %15 : vector<1x128xf32> to vector<256x128xf32>
      %17 = arith.addf %14, %16 : vector<256x128xf32>
      %cst_11 = arith.constant 0.000000e+00 : f32
      %18 = vector.broadcast %cst_11 : f32 to vector<256x128xf32>
      %19 = arith.cmpf ogt, %17, %18 : vector<256x128xf32>
      %cst_12 = arith.constant 2.000000e-01 : f32
      %20 = vector.broadcast %cst_12 : f32 to vector<256x128xf32>
      %21 = arith.mulf %20, %17 : vector<256x128xf32>
      %22 = arith.select %19, %17, %21 : vector<256x128xi1>, vector<256x128xf32>
      %23 = arith.truncf %22 : vector<256x128xf32> to vector<256x128xbf16>
      %c0_13 = arith.constant 0 : index
      %c0_14 = arith.constant 0 : index
      %24 = vector.load %arg6[%c0_13, %c0_14] : memref<256x128xbf16, #tpu.memory_space<vmem>>, vector<256x128xbf16>
      tpu.vector_store %arg6[%c0_13, %c0_14], %23 {strides = array<i32>} : memref<256x128xbf16, #tpu.memory_space<vmem>>, vector<256x128xbf16>,
    } else {
    }
    return
  }
  func.func @transform_0(%arg0: i32, %arg1: i32) -> (i32, i32) {
    %c0_i32 = arith.constant 0 : i32
    %c0_i32_0 = arith.constant 0 : i32
    return %arg1, %c0_i32 : i32, i32
  }
  func.func @transform_1(%arg0: i32, %arg1: i32) -> (i32, i32) {
    %c0_i32 = arith.constant 0 : i32
    %c0_i32_0 = arith.constant 0 : i32
    %c0_i32_1 = arith.constant 0 : i32
    return %c0_i32, %c0_i32_0 : i32, i32
  }
  func.func @transform_2(%arg0: i32, %arg1: i32) -> (i32, i32) {
    %c0_i32 = arith.constant 0 : i32
    %c0_i32_0 = arith.constant 0 : i32
    %c0_i32_1 = arith.constant 0 : i32
    return %c0_i32, %c0_i32_0 : i32, i32
  }
  func.func @transform_3(%arg0: i32, %arg1: i32) -> (i32, i32) {
    %c0_i32 = arith.constant 0 : i32
    %c0_i32_0 = arith.constant 0 : i32
    %c0_i32_1 = arith.constant 0 : i32
    return %c0_i32, %c0_i32_0 : i32, i32
  }
  func.func @transform_4(%arg0: i32, %arg1: i32) -> (i32, i32) {
    %0 = arith.muli %arg0, %arg1 : i32
    %c0_i32 = arith.constant 0 : i32
    %c0_i32_0 = arith.constant 0 : i32
    return %0, %c0_i32 : i32, i32
  }
}

module attributes {stable_mosaic.version = 11 : i64} {
  func.func @_mm_bn_lrelu_tiled_kernel(%arg0: i32, %arg1: i32, %arg2: memref<128x256xbf16, #tpu.memory_space<vmem>>, %arg3: memref<256x128xbf16, #tpu.memory_space<vmem>>, %arg4: memref<1x128xf32, #tpu.memory_space<vmem>>, %arg5: memref<1x128xf32, #tpu.memory_space<vmem>>, %arg6: memref<128x128xbf16, #tpu.memory_space<vmem>>, %arg7: memref<1x128xf32, #tpu.memory_space<vmem>>, %arg8: memref<1x128xf32, #tpu.memory_space<vmem>>, %arg9: memref<1x128xf32, #tpu.memory_space<vmem>>, %arg10: memref<1x128xf32, #tpu.memory_space<vmem>>) attributes {dimension_semantics = [#tpu.dimension_semantics<arbitrary>, #tpu.dimension_semantics<arbitrary>], iteration_bounds = array<i64: 2, 1>, scalar_prefetch = 0 : i64, scratch_operands = 4 : i64, tpu.core_type = #tpu.core_type<tc>, window_params = [{transform_indices = @transform_0, window_bounds = array<i64: 128, 256>}, {pipeline_mode = #tpu.pipeline_mode<synchronous>, transform_indices = @transform_1, window_bounds = array<i64: 256, 128>}, {pipeline_mode = #tpu.pipeline_mode<synchronous>, transform_indices = @transform_2, window_bounds = array<i64: 1, 128>}, {pipeline_mode = #tpu.pipeline_mode<synchronous>, transform_indices = @transform_3, window_bounds = array<i64: 1, 128>}, {transform_indices = @transform_4, window_bounds = array<i64: 128, 128>}]} {
    %c0 = arith.constant 0 : index
    %c0_0 = arith.constant 0 : index
    %0 = vector.load %arg2[%c0, %c0_0] : memref<128x256xbf16, #tpu.memory_space<vmem>>, vector<128x256xbf16>
    %c0_1 = arith.constant 0 : index
    %c0_2 = arith.constant 0 : index
    %1 = vector.load %arg3[%c0_1, %c0_2] : memref<256x128xbf16, #tpu.memory_space<vmem>>, vector<256x128xbf16>
    %cst = arith.constant dense<0.000000e+00> : vector<128x128xf32>
    %2 = tpu.matmul %0, %1, %cst {dimension_numbers = #tpu.dot_dimension_numbers<[1], [0], [0], [1], [0, 0, 1, 1], [], []>} : vector<128x256xbf16>, vector<256x128xbf16>, vector<128x128xf32> -> vector<128x128xf32>
    %c0_i32 = arith.constant 0 : i32
    %3 = arith.cmpi eq, %arg0, %c0_i32 : i32
    %4 = arith.extui %3 : i1 to i32
    %c0_i32_3 = arith.constant 0 : i32
    %5 = arith.cmpi ne, %4, %c0_i32_3 : i32
    scf.if %5 {
      %c0_i32_5 = arith.constant 0 : i32
      %9 = arith.cmpi eq, %arg1, %c0_i32_5 : i32
      %10 = arith.extui %9 : i1 to i32
      %c0_i32_6 = arith.constant 0 : i32
      %11 = arith.cmpi ne, %10, %c0_i32_6 : i32
      scf.if %11 {
        %cst_17 = arith.constant 0.000000e+00 : f32
        %23 = vector.broadcast %cst_17 : f32 to vector<1x128xf32>
        %c0_18 = arith.constant 0 : index
        %c0_19 = arith.constant 0 : index
        %24 = vector.load %arg7[%c0_18, %c0_19] : memref<1x128xf32, #tpu.memory_space<vmem>>, vector<1x128xf32>
        tpu.vector_store %arg7[%c0_18, %c0_19], %23 {strides = array<i32>} : memref<1x128xf32, #tpu.memory_space<vmem>>, vector<1x128xf32>,
        %cst_20 = arith.constant 0.000000e+00 : f32
        %25 = vector.broadcast %cst_20 : f32 to vector<1x128xf32>
        %c0_21 = arith.constant 0 : index
        %c0_22 = arith.constant 0 : index
        %26 = vector.load %arg8[%c0_21, %c0_22] : memref<1x128xf32, #tpu.memory_space<vmem>>, vector<1x128xf32>
        tpu.vector_store %arg8[%c0_21, %c0_22], %25 {strides = array<i32>} : memref<1x128xf32, #tpu.memory_space<vmem>>, vector<1x128xf32>,
      } else {
      }
      %c0_7 = arith.constant 0 : index
      %c0_8 = arith.constant 0 : index
      %12 = vector.load %arg7[%c0_7, %c0_8] : memref<1x128xf32, #tpu.memory_space<vmem>>, vector<1x128xf32>
      %cst_9 = arith.constant dense<0.000000e+00> : vector<128xf32>
      %13 = vector.multi_reduction <add>, %2, %cst_9 [0] : vector<128x128xf32> to vector<128xf32>
      %14 = vector.shape_cast %13 : vector<128xf32> to vector<1x128xf32>
      %15 = arith.addf %12, %14 : vector<1x128xf32>
      %c0_10 = arith.constant 0 : index
      %c0_11 = arith.constant 0 : index
      %16 = vector.load %arg7[%c0_10, %c0_11] : memref<1x128xf32, #tpu.memory_space<vmem>>, vector<1x128xf32>
      tpu.vector_store %arg7[%c0_10, %c0_11], %15 {strides = array<i32>} : memref<1x128xf32, #tpu.memory_space<vmem>>, vector<1x128xf32>,
      %c0_12 = arith.constant 0 : index
      %c0_13 = arith.constant 0 : index
      %17 = vector.load %arg8[%c0_12, %c0_13] : memref<1x128xf32, #tpu.memory_space<vmem>>, vector<1x128xf32>
      %18 = arith.mulf %2, %2 : vector<128x128xf32>
      %cst_14 = arith.constant dense<0.000000e+00> : vector<128xf32>
      %19 = vector.multi_reduction <add>, %18, %cst_14 [0] : vector<128x128xf32> to vector<128xf32>
      %20 = vector.shape_cast %19 : vector<128xf32> to vector<1x128xf32>
      %21 = arith.addf %17, %20 : vector<1x128xf32>
      %c0_15 = arith.constant 0 : index
      %c0_16 = arith.constant 0 : index
      %22 = vector.load %arg8[%c0_15, %c0_16] : memref<1x128xf32, #tpu.memory_space<vmem>>, vector<1x128xf32>
      tpu.vector_store %arg8[%c0_15, %c0_16], %21 {strides = array<i32>} : memref<1x128xf32, #tpu.memory_space<vmem>>, vector<1x128xf32>,
    } else {
    }
    %c1_i32 = arith.constant 1 : i32
    %6 = arith.cmpi eq, %arg0, %c1_i32 : i32
    %7 = arith.extui %6 : i1 to i32
    %c0_i32_4 = arith.constant 0 : i32
    %8 = arith.cmpi ne, %7, %c0_i32_4 : i32
    scf.if %8 {
      %c0_i32_5 = arith.constant 0 : i32
      %9 = arith.cmpi eq, %arg1, %c0_i32_5 : i32
      %10 = arith.extui %9 : i1 to i32
      %c0_i32_6 = arith.constant 0 : i32
      %11 = arith.cmpi ne, %10, %c0_i32_6 : i32
      scf.if %11 {
        %c0_15 = arith.constant 0 : index
        %c0_16 = arith.constant 0 : index
        %25 = vector.load %arg7[%c0_15, %c0_16] : memref<1x128xf32, #tpu.memory_space<vmem>>, vector<1x128xf32>
        %cst_17 = arith.constant 7.812500e-03 : f32
        %26 = vector.broadcast %cst_17 : f32 to vector<1x128xf32>
        %27 = arith.mulf %25, %26 : vector<1x128xf32>
        %c0_18 = arith.constant 0 : index
        %c0_19 = arith.constant 0 : index
        %28 = vector.load %arg8[%c0_18, %c0_19] : memref<1x128xf32, #tpu.memory_space<vmem>>, vector<1x128xf32>
        %cst_20 = arith.constant 7.812500e-03 : f32
        %29 = vector.broadcast %cst_20 : f32 to vector<1x128xf32>
        %30 = arith.mulf %28, %29 : vector<1x128xf32>
        %31 = arith.mulf %27, %27 : vector<1x128xf32>
        %32 = arith.subf %30, %31 : vector<1x128xf32>
        %c0_21 = arith.constant 0 : index
        %c0_22 = arith.constant 0 : index
        %33 = vector.load %arg4[%c0_21, %c0_22] : memref<1x128xf32, #tpu.memory_space<vmem>>, vector<1x128xf32>
        %cst_23 = arith.constant 9.99999974E-6 : f32
        %34 = vector.broadcast %cst_23 : f32 to vector<1x128xf32>
        %35 = arith.addf %32, %34 : vector<1x128xf32>
        %36 = math.rsqrt %35 : vector<1x128xf32>
        %37 = arith.mulf %33, %36 : vector<1x128xf32>
        %c0_24 = arith.constant 0 : index
        %c0_25 = arith.constant 0 : index
        %38 = vector.load %arg9[%c0_24, %c0_25] : memref<1x128xf32, #tpu.memory_space<vmem>>, vector<1x128xf32>
        tpu.vector_store %arg9[%c0_24, %c0_25], %37 {strides = array<i32>} : memref<1x128xf32, #tpu.memory_space<vmem>>, vector<1x128xf32>,
        %c0_26 = arith.constant 0 : index
        %c0_27 = arith.constant 0 : index
        %39 = vector.load %arg5[%c0_26, %c0_27] : memref<1x128xf32, #tpu.memory_space<vmem>>, vector<1x128xf32>
        %40 = arith.mulf %27, %37 : vector<1x128xf32>
        %41 = arith.subf %39, %40 : vector<1x128xf32>
        %c0_28 = arith.constant 0 : index
        %c0_29 = arith.constant 0 : index
        %42 = vector.load %arg10[%c0_28, %c0_29] : memref<1x128xf32, #tpu.memory_space<vmem>>, vector<1x128xf32>
        tpu.vector_store %arg10[%c0_28, %c0_29], %41 {strides = array<i32>} : memref<1x128xf32, #tpu.memory_space<vmem>>, vector<1x128xf32>,
      } else {
      }
      %c0_7 = arith.constant 0 : index
      %c0_8 = arith.constant 0 : index
      %12 = vector.load %arg9[%c0_7, %c0_8] : memref<1x128xf32, #tpu.memory_space<vmem>>, vector<1x128xf32>
      %13 = vector.broadcast %12 : vector<1x128xf32> to vector<128x128xf32>
      %14 = arith.mulf %2, %13 : vector<128x128xf32>
      %c0_9 = arith.constant 0 : index
      %c0_10 = arith.constant 0 : index
      %15 = vector.load %arg10[%c0_9, %c0_10] : memref<1x128xf32, #tpu.memory_space<vmem>>, vector<1x128xf32>
      %16 = vector.broadcast %15 : vector<1x128xf32> to vector<128x128xf32>
      %17 = arith.addf %14, %16 : vector<128x128xf32>
      %cst_11 = arith.constant 0.000000e+00 : f32
      %18 = vector.broadcast %cst_11 : f32 to vector<128x128xf32>
      %19 = arith.cmpf ogt, %17, %18 : vector<128x128xf32>
      %cst_12 = arith.constant 2.000000e-01 : f32
      %20 = vector.broadcast %cst_12 : f32 to vector<128x128xf32>
      %21 = arith.mulf %20, %17 : vector<128x128xf32>
      %22 = arith.select %19, %17, %21 : vector<128x128xi1>, vector<128x128xf32>
      %23 = arith.truncf %22 : vector<128x128xf32> to vector<128x128xbf16>
      %c0_13 = arith.constant 0 : index
      %c0_14 = arith.constant 0 : index
      %24 = vector.load %arg6[%c0_13, %c0_14] : memref<128x128xbf16, #tpu.memory_space<vmem>>, vector<128x128xbf16>
      tpu.vector_store %arg6[%c0_13, %c0_14], %23 {strides = array<i32>} : memref<128x128xbf16, #tpu.memory_space<vmem>>, vector<128x128xbf16>,
    } else {
    }
    return
  }
  func.func @transform_0(%arg0: i32, %arg1: i32) -> (i32, i32) {
    %c0_i32 = arith.constant 0 : i32
    %c0_i32_0 = arith.constant 0 : i32
    return %arg1, %c0_i32 : i32, i32
  }
  func.func @transform_1(%arg0: i32, %arg1: i32) -> (i32, i32) {
    %c0_i32 = arith.constant 0 : i32
    %c0_i32_0 = arith.constant 0 : i32
    %c0_i32_1 = arith.constant 0 : i32
    return %c0_i32, %c0_i32_0 : i32, i32
  }
  func.func @transform_2(%arg0: i32, %arg1: i32) -> (i32, i32) {
    %c0_i32 = arith.constant 0 : i32
    %c0_i32_0 = arith.constant 0 : i32
    %c0_i32_1 = arith.constant 0 : i32
    return %c0_i32, %c0_i32_0 : i32, i32
  }
  func.func @transform_3(%arg0: i32, %arg1: i32) -> (i32, i32) {
    %c0_i32 = arith.constant 0 : i32
    %c0_i32_0 = arith.constant 0 : i32
    %c0_i32_1 = arith.constant 0 : i32
    return %c0_i32, %c0_i32_0 : i32, i32
  }
  func.func @transform_4(%arg0: i32, %arg1: i32) -> (i32, i32) {
    %0 = arith.muli %arg0, %arg1 : i32
    %c0_i32 = arith.constant 0 : i32
    %c0_i32_0 = arith.constant 0 : i32
    return %0, %c0_i32 : i32, i32
  }
}

module attributes {stable_mosaic.version = 11 : i64} {
  func.func @_head_kernel(%arg0: memref<32x512xbf16, #tpu.memory_space<vmem>>, %arg1: memref<512x128xbf16, #tpu.memory_space<vmem>>, %arg2: memref<1x128xf32, #tpu.memory_space<vmem>>, %arg3: memref<1x128xf32, #tpu.memory_space<vmem>>, %arg4: memref<32x128xf32, #tpu.memory_space<vmem>>, %arg5: memref<2x32xf32, #tpu.memory_space<vmem>>, %arg6: memref<1x1xf32, #tpu.memory_space<vmem>>, %arg7: memref<2x1xf32, #tpu.memory_space<vmem>>) attributes {dimension_semantics = [], scalar_prefetch = 0 : i64, scratch_operands = 0 : i64, tpu.core_type = #tpu.core_type<tc>} {
    %c0 = arith.constant 0 : index
    %c0_0 = arith.constant 0 : index
    %0 = vector.load %arg0[%c0, %c0_0] : memref<32x512xbf16, #tpu.memory_space<vmem>>, vector<32x512xbf16>
    %c0_1 = arith.constant 0 : index
    %c0_2 = arith.constant 0 : index
    %1 = vector.load %arg1[%c0_1, %c0_2] : memref<512x128xbf16, #tpu.memory_space<vmem>>, vector<512x128xbf16>
    %cst = arith.constant dense<0.000000e+00> : vector<32x128xf32>
    %2 = tpu.matmul %0, %1, %cst {dimension_numbers = #tpu.dot_dimension_numbers<[1], [0], [0], [1], [0, 0, 1, 1], [], []>} : vector<32x512xbf16>, vector<512x128xbf16>, vector<32x128xf32> -> vector<32x128xf32>
    %cst_3 = arith.constant dense<0.000000e+00> : vector<128xf32>
    %3 = vector.multi_reduction <add>, %2, %cst_3 [0] : vector<32x128xf32> to vector<128xf32>
    %4 = vector.shape_cast %3 : vector<128xf32> to vector<1x128xf32>
    %cst_4 = arith.constant 3.200000e+01 : f32
    %5 = vector.broadcast %cst_4 : f32 to vector<1x128xf32>
    %6 = arith.divf %4, %5 : vector<1x128xf32>
    %7 = arith.mulf %2, %2 : vector<32x128xf32>
    %cst_5 = arith.constant dense<0.000000e+00> : vector<128xf32>
    %8 = vector.multi_reduction <add>, %7, %cst_5 [0] : vector<32x128xf32> to vector<128xf32>
    %9 = vector.shape_cast %8 : vector<128xf32> to vector<1x128xf32>
    %cst_6 = arith.constant 3.200000e+01 : f32
    %10 = vector.broadcast %cst_6 : f32 to vector<1x128xf32>
    %11 = arith.divf %9, %10 : vector<1x128xf32>
    %12 = arith.mulf %6, %6 : vector<1x128xf32>
    %13 = arith.subf %11, %12 : vector<1x128xf32>
    %c0_7 = arith.constant 0 : index
    %c0_8 = arith.constant 0 : index
    %14 = vector.load %arg2[%c0_7, %c0_8] : memref<1x128xf32, #tpu.memory_space<vmem>>, vector<1x128xf32>
    %cst_9 = arith.constant 9.99999974E-6 : f32
    %15 = vector.broadcast %cst_9 : f32 to vector<1x128xf32>
    %16 = arith.addf %13, %15 : vector<1x128xf32>
    %17 = math.rsqrt %16 : vector<1x128xf32>
    %18 = arith.mulf %14, %17 : vector<1x128xf32>
    %c0_10 = arith.constant 0 : index
    %c0_11 = arith.constant 0 : index
    %19 = vector.load %arg3[%c0_10, %c0_11] : memref<1x128xf32, #tpu.memory_space<vmem>>, vector<1x128xf32>
    %20 = arith.mulf %6, %18 : vector<1x128xf32>
    %21 = arith.subf %19, %20 : vector<1x128xf32>
    %22 = vector.broadcast %18 : vector<1x128xf32> to vector<32x128xf32>
    %23 = arith.mulf %2, %22 : vector<32x128xf32>
    %24 = vector.broadcast %21 : vector<1x128xf32> to vector<32x128xf32>
    %25 = arith.addf %23, %24 : vector<32x128xf32>
    %cst_12 = arith.constant 0.000000e+00 : f32
    %26 = vector.broadcast %cst_12 : f32 to vector<32x128xf32>
    %27 = arith.cmpf ogt, %25, %26 : vector<32x128xf32>
    %cst_13 = arith.constant 2.000000e-01 : f32
    %28 = vector.broadcast %cst_13 : f32 to vector<32x128xf32>
    %29 = arith.mulf %28, %25 : vector<32x128xf32>
    %30 = arith.select %27, %25, %29 : vector<32x128xi1>, vector<32x128xf32>
    %c0_14 = arith.constant 0 : index
    %c0_15 = arith.constant 0 : index
    %31 = vector.load %arg4[%c0_14, %c0_15] : memref<32x128xf32, #tpu.memory_space<vmem>>, vector<32x128xf32>
    %32 = arith.mulf %30, %31 : vector<32x128xf32>
    %cst_16 = arith.constant dense<0.000000e+00> : vector<32xf32>
    %33 = vector.multi_reduction <add>, %32, %cst_16 [1] : vector<32x128xf32> to vector<32xf32>
    %34 = vector.shape_cast %33 : vector<32xf32> to vector<32x1xf32>
    %c0_17 = arith.constant 0 : index
    %c0_18 = arith.constant 0 : index
    %35 = vector.load %arg5[%c0_17, %c0_18] : memref<2x32xf32, #tpu.memory_space<vmem>>, vector<2x32xf32>
    %cst_19 = arith.constant dense<0.000000e+00> : vector<2x1xf32>
    %36 = tpu.matmul %35, %34, %cst_19 {dimension_numbers = #tpu.dot_dimension_numbers<[1], [0], [0], [1], [0, 0, 1, 1], [], []>} : vector<2x32xf32>, vector<32x1xf32>, vector<2x1xf32> -> vector<2x1xf32>
    %c0_20 = arith.constant 0 : index
    %c0_21 = arith.constant 0 : index
    %37 = vector.load %arg6[%c0_20, %c0_21] : memref<1x1xf32, #tpu.memory_space<vmem>>, vector<1x1xf32>
    %38 = vector.broadcast %37 : vector<1x1xf32> to vector<2x1xf32>
    %39 = arith.addf %36, %38 : vector<2x1xf32>
    %c0_22 = arith.constant 0 : index
    %c0_23 = arith.constant 0 : index
    %40 = vector.load %arg7[%c0_22, %c0_23] : memref<2x1xf32, #tpu.memory_space<vmem>>, vector<2x1xf32>
    tpu.vector_store %arg7[%c0_22, %c0_23], %39 {strides = array<i32>} : memref<2x1xf32, #tpu.memory_space<vmem>>, vector<2x1xf32>,
    return
  }
}

</mosaic_0001>

<bundles_post_ra>
// kernel: critic_forward.4
= control target key start
LH: loop header
LB: loop body
LE: loop exit
PB: predicated region body
PF: predicated region fallthrough
CT: control target
= control target key end

     0   :  { %s1492_s12 = smov 0   ;;  %s1688_s0 = inlined_call_operand.vmem [shape: bf16[2048,16], index: 0, kind: input, shape index: {}]   ;;  %s1689_s1 = inlined_call_operand.vmem [shape: bf16[16,128], index: 1, kind: input, shape index: {}]   ;;  %s1690_s2 = inlined_call_operand.vmem [shape: f32[1,128], index: 2, kind: input, shape index: {}]   ;;  %s1691_s3 = inlined_call_operand.vmem [shape: bf16[2048,128], index: 3, kind: output, shape index: {}]  }
   0x1 LB: > { %s1053_s13 = sadd.s32 4294967295, %s1470_s12   ;;  %p1057_p0 = scmp.ge.s32.totalorder %s1470_s12, 1  ;;  %s1470_s12 = sphi %s1492_s12, %s13_s12  }
   0x2   : > { %p138_p1 = scmp.lt.s32.totalorder %s1470_s12, 5 }
   0x4   : > { %p139_p2 = pnand %p1057_p0, %p138_p1 }
   0x5   : > { %s1058_s16 = sshll.u32 (!%p139_p2), %s1053_s13, 6 }
   0x6   : > { %142 = sbr.rel (%p139_p2) target bundleno = 278 (0x116), region = 32  ;;  %p163_p3 = scmp.lt.s32.totalorder (!%p139_p2), %s1058_s16, 255 }
   0xb   : > { %v1260_v0 = vld [vmem:[%s1689_s1] sm:$0xff]  ;;  %s1693_s16 = smov (!%p163_p3, %s1058_s16), 255  ;;  %vm411_vm0 = vcmask 130048  }
   0xc   : > { %515 = vmatpush.bf16.msra.mxu0 %v1260_v0  ;;  %1452 = vmatpush.bf16.msra.mxu1 %v1260_v0  ;;  %s1059_s17 = sshll.u32 %s1693_s16, 2  ;;  %v1580_v35 = vld [vmem:[%s1690_s2] ss:$0 sm:$0xff] }
   0xd   : > { %1453 = vmatpush.bf16.msra.mxu2 %v1260_v0  ;;  %1454 = vmatpush.bf16.msra.mxu3 %v1260_v0  ;;  %s1511_s20 = scalar_lea.vmem %s1688_s0, %s1059_s17  ;;  %s1593_s25 = scalar_lea.vmem %s1691_s3, %s1059_s17 }
   0xe   : > { %v1228_v1 = vld [vmem:[%s1511_s20] sm:$0xff]  ;;  %v1229_v5 = vld [vmem:[%s1511_s20 + $0x8] sm:$0xff]  ;;  %v1230_v9 = vld [vmem:[%s1511_s20 + $0x10] sm:$0xff] }
   0xf   : > { %v1236_v2 = vld [vmem:[%s1511_s20 + $0x40] sm:$0xff]  ;;  %1194 = vmatmul.msk.bf16.vlgmr.msra.gmra.mxu0 %vm411_vm0, %v1228_v1  ;;  %v1237_v6 = vld [vmem:[%s1511_s20 + $0x48] sm:$0xff]  ;;  %v1238_v10 = vld [vmem:[%s1511_s20 + $0x50] sm:$0xff] }
  0x10   : > { %v1244_v3 = vld [vmem:[%s1511_s20 + $0x80] sm:$0xff]  ;;  %1202 = vmatmul.msk.bf16.vlgmr.msra.gmra.mxu1 %vm411_vm0, %v1236_v2  ;;  %v1245_v7 = vld [vmem:[%s1511_s20 + $0x88] sm:$0xff]  ;;  %v1246_v11 = vld [vmem:[%s1511_s20 + $0x90] sm:$0xff] }
  0x11   : > { %v1252_v4 = vld [vmem:[%s1511_s20 + $0xc0] sm:$0xff]  ;;  %1210 = vmatmul.msk.bf16.vlgmr.msra.gmra.mxu2 %vm411_vm0, %v1244_v3  ;;  %v1253_v8 = vld [vmem:[%s1511_s20 + $0xc8] sm:$0xff]  ;;  %v1254_v12 = vld [vmem:[%s1511_s20 + $0xd0] sm:$0xff] }
  0x12   : > { %1218 = vmatmul.msk.bf16.vlgmr.msra.gmra.mxu3 %vm411_vm0, %v1252_v4  ;;  %v1231_v13 = vld [vmem:[%s1511_s20 + $0x18] sm:$0xff]  ;;  %v1232_v17 = vld [vmem:[%s1511_s20 + $0x20] sm:$0xff]  ;;  %v1233_v21 = vld [vmem:[%s1511_s20 + $0x28] sm:$0xff] }
  0x13   : > { %v1239_v14 = vld [vmem:[%s1511_s20 + $0x58] sm:$0xff]  ;;  %v1240_v18 = vld [vmem:[%s1511_s20 + $0x60] sm:$0xff]  ;;  %v1241_v22 = vld [vmem:[%s1511_s20 + $0x68] sm:$0xff] }
  0x14   : > { %v1247_v15 = vld [vmem:[%s1511_s20 + $0x98] sm:$0xff]  ;;  %v1248_v19 = vld [vmem:[%s1511_s20 + $0xa0] sm:$0xff]  ;;  %v1249_v23 = vld [vmem:[%s1511_s20 + $0xa8] sm:$0xff] }
  0x15   : > { %v1255_v16 = vld [vmem:[%s1511_s20 + $0xd8] sm:$0xff]  ;;  %v1256_v20 = vld [vmem:[%s1511_s20 + $0xe0] sm:$0xff]  ;;  %v1257_v24 = vld [vmem:[%s1511_s20 + $0xe8] sm:$0xff] }
  0x16   : > { %v1234_v25 = vld [vmem:[%s1511_s20 + $0x30] sm:$0xff]  ;;  %v1235_v29 = vld [vmem:[%s1511_s20 + $0x38] sm:$0xff] }
  0x17   : > { %v1242_v26 = vld [vmem:[%s1511_s20 + $0x70] sm:$0xff]  ;;  %v1243_v30 = vld [vmem:[%s1511_s20 + $0x78] sm:$0xff] }
  0x18   : > { %v1250_v27 = vld [vmem:[%s1511_s20 + $0xb0] sm:$0xff]  ;;  %v1251_v31 = vld [vmem:[%s1511_s20 + $0xb8] sm:$0xff] }
  0x19   : > { %v1258_v28 = vld [vmem:[%s1511_s20 + $0xf0] sm:$0xff]  ;;  %v1259_v32 = vld [vmem:[%s1511_s20 + $0xf8] sm:$0xff] }
  0x1f   : > { %1195 = vmatmul.msk.bf16.gmra.mxu0 %vm411_vm0, %v1229_v5 }
  0x20   : > { %1203 = vmatmul.msk.bf16.gmra.mxu1 %vm411_vm0, %v1237_v6 }
  0x21   : > { %1211 = vmatmul.msk.bf16.gmra.mxu2 %vm411_vm0, %v1245_v7 }
  0x22   : > { %1219 = vmatmul.msk.bf16.gmra.mxu3 %vm411_vm0, %v1253_v8 }
  0x2f   : > { %1196 = vmatmul.msk.bf16.gmra.mxu0 %vm411_vm0, %v1230_v9 }
  0x30   : > { %1204 = vmatmul.msk.bf16.gmra.mxu1 %vm411_vm0, %v1238_v10 }
  0x31   : > { %1212 = vmatmul.msk.bf16.gmra.mxu2 %vm411_vm0, %v1246_v11 }
  0x32   : > { %1220 = vmatmul.msk.bf16.gmra.mxu3 %vm411_vm0, %v1254_v12 }
  0x3f   : > { %1197 = vmatmul.msk.bf16.gmra.mxu0 %vm411_vm0, %v1231_v13 }
  0x40   : > { %1205 = vmatmul.msk.bf16.gmra.mxu1 %vm411_vm0, %v1239_v14 }
  0x41   : > { %1213 = vmatmul.msk.bf16.gmra.mxu2 %vm411_vm0, %v1247_v15 }
  0x42   : > { %1221 = vmatmul.msk.bf16.gmra.mxu3 %vm411_vm0, %v1255_v16 }
  0x4f   : > { %1198 = vmatmul.msk.bf16.gmra.mxu0 %vm411_vm0, %v1232_v17 }
  0x50   : > { %1206 = vmatmul.msk.bf16.gmra.mxu1 %vm411_vm0, %v1240_v18 }
  0x51   : > { %1214 = vmatmul.msk.bf16.gmra.mxu2 %vm411_vm0, %v1248_v19 }
  0x52   : > { %1222 = vmatmul.msk.bf16.gmra.mxu3 %vm411_vm0, %v1256_v20 }
  0x5f   : > { %1199 = vmatmul.msk.bf16.gmra.mxu0 %vm411_vm0, %v1233_v21 }
  0x60   : > { %1207 = vmatmul.msk.bf16.gmra.mxu1 %vm411_vm0, %v1241_v22 }
  0x61   : > { %1215 = vmatmul.msk.bf16.gmra.mxu2 %vm411_vm0, %v1249_v23 }
  0x62   : > { %1223 = vmatmul.msk.bf16.gmra.mxu3 %vm411_vm0, %v1257_v24 }
  0x6f   : > { %1200 = vmatmul.msk.bf16.gmra.mxu0 %vm411_vm0, %v1234_v25 }
  0x70   : > { %1208 = vmatmul.msk.bf16.gmra.mxu1 %vm411_vm0, %v1242_v26 }
  0x71   : > { %1216 = vmatmul.msk.bf16.gmra.mxu2 %vm411_vm0, %v1250_v27 }
  0x72   : > { %1224 = vmatmul.msk.bf16.gmra.mxu3 %vm411_vm0, %v1258_v28 }
  0x7f   : > { %1201 = vmatmul.msk.bf16.gmra.mxu0 %vm411_vm0, %v1235_v29 }
  0x80   : > { %1209 = vmatmul.msk.bf16.gmra.mxu1 %vm411_vm0, %v1243_v30 }
  0x81   : > { %1217 = vmatmul.msk.bf16.gmra.mxu2 %vm411_vm0, %v1251_v31 }
  0x82   : > { %1225 = vmatmul.msk.bf16.gmra.mxu3 %vm411_vm0, %v1259_v32 }
  0x8c   : > { %v517_v33 = vpop.f32.mrf.mxu0 }
  0x8d   : > { %v557_v34 = vpop.f32.mrf.mxu1  ;;  %v518_v36 = vadd.f32 %v1580_v35, %v517_v33 }
  0x8e   : > { %v558_v37 = vadd.f32 %v1580_v35, %v557_v34 }
  0x8f   : > { %v741_v42 = vmul.f32 0.2, %v518_v36  ;;  %vm677_vm1 = vcmp.gt.f32.partialorder %v518_v36, 0.0 }
  0x90   : > { %v757_v43 = vmul.f32 0.2, %v558_v37  ;;  %vm693_vm2 = vcmp.gt.f32.partialorder %v558_v37, 0.0 }
  0x91   : > { %v805_v50 = vsel %vm677_vm1, %v518_v36, %v741_v42 }
  0x92   : > { %v821_v51 = vsel %vm693_vm2, %v558_v37, %v757_v43 }
  0x94   : > { %v597_v38 = vpop.f32.mrf.mxu2  ;;  %v519_v40 = vpop.f32.mrf.mxu0 }
  0x95   : > { %v637_v39 = vpop.f32.mrf.mxu3  ;;  %v559_v41 = vpop.f32.mrf.mxu1  ;;  %v520_v44 = vadd.f32 %v1580_v35, %v519_v40  ;;  %v598_v48 = vadd.f32 %v1580_v35, %v597_v38 }
  0x96   : > { %v560_v45 = vadd.f32 %v1580_v35, %v559_v41  ;;  %v638_v49 = vadd.f32 %v1580_v35, %v637_v39 }
  0x97   : > { %vm678_vm3 = vcmp.gt.f32.partialorder %v520_v44, 0.0  ;;  %v742_v46 = vmul.f32 0.2, %v520_v44  ;;  %v773_v58 = vmul.f32 0.2, %v598_v48  ;;  %vm709_vm5 = vcmp.gt.f32.partialorder %v598_v48, 0.0 }
  0x98   : > { %vm694_vm4 = vcmp.gt.f32.partialorder %v560_v45, 0.0  ;;  %v758_v47 = vmul.f32 0.2, %v560_v45  ;;  %v789_v59 = vmul.f32 0.2, %v638_v49  ;;  %vm725_vm6 = vcmp.gt.f32.partialorder %v638_v49, 0.0 }
  0x99   : > { %v806_v52 = vsel %vm678_vm3, %v520_v44, %v742_v46  ;;  %v837_v2 = vsel %vm709_vm5, %v598_v48, %v773_v58 }
  0x9a   : > { %v822_v53 = vsel %vm694_vm4, %v560_v45, %v758_v47  ;;  %v1264_v54 = vpack.c.bf16 %v806_v52, %v805_v50  ;;  %v853_v3 = vsel %vm725_vm6, %v638_v49, %v789_v59 }
  0x9b   : > { %v1304_v55 = vpack.c.bf16 %v822_v53, %v821_v51 }
  0x9c   : > { %v599_v56 = vpop.f32.mrf.mxu2  ;;  %1265 = vst [vmem:[%s1593_s25] sm:$0xff] %v1264_v54   ;;  %v522_v62 = vpop.f32.mrf.mxu0 }
  0x9d   : > { %v639_v57 = vpop.f32.mrf.mxu3  ;;  %v600_v60 = vadd.f32 %v1580_v35, %v599_v56  ;;  %v562_v63 = vpop.f32.mrf.mxu1  ;;  %1428 = vst [vmem:[%s1593_s25 + $0x40] sm:$0xff] %v1304_v55   ;;  %v523_v8 = vadd.f32 %v1580_v35, %v522_v62 }
  0x9e   : > { %v640_v61 = vadd.f32 %v1580_v35, %v639_v57  ;;  %v563_v9 = vadd.f32 %v1580_v35, %v562_v63 }
  0x9f   : > { %vm710_vm7 = vcmp.gt.f32.partialorder %v600_v60, 0.0  ;;  %v774_v0 = vmul.f32 0.2, %v600_v60  ;;  %v743_v14 = vmul.f32 0.2, %v523_v8  ;;  %vm679_vm9 = vcmp.gt.f32.partialorder %v523_v8, 0.0 }
  0xa0   : > { %vm726_vm8 = vcmp.gt.f32.partialorder %v640_v61, 0.0  ;;  %v790_v1 = vmul.f32 0.2, %v640_v61  ;;  %v759_v15 = vmul.f32 0.2, %v563_v9  ;;  %vm695_vm10 = vcmp.gt.f32.partialorder %v563_v9, 0.0 }
  0xa1   : > { %v838_v4 = vsel %vm710_vm7, %v600_v60, %v774_v0  ;;  %v807_v22 = vsel %vm679_vm9, %v523_v8, %v743_v14 }
  0xa2   : > { %v854_v5 = vsel %vm726_vm8, %v640_v61, %v790_v1  ;;  %v1344_v6 = vpack.c.bf16 %v838_v4, %v837_v2  ;;  %v823_v23 = vsel %vm695_vm10, %v563_v9, %v759_v15 }
  0xa3   : > { %v1384_v7 = vpack.c.bf16 %v854_v5, %v853_v3 }
  0xa4   : > { %1436 = vst [vmem:[%s1593_s25 + $0x80] sm:$0xff] %v1344_v6   ;;  %v602_v10 = vpop.f32.mrf.mxu2  ;;  %v524_v12 = vpop.f32.mrf.mxu0 }
  0xa5   : > { %v642_v11 = vpop.f32.mrf.mxu3  ;;  %1444 = vst [vmem:[%s1593_s25 + $0xc0] sm:$0xff] %v1384_v7   ;;  %v564_v13 = vpop.f32.mrf.mxu1  ;;  %v525_v16 = vadd.f32 %v1580_v35, %v524_v12  ;;  %v603_v20 = vadd.f32 %v1580_v35, %v602_v10 }
  0xa6   : > { %v565_v17 = vadd.f32 %v1580_v35, %v564_v13  ;;  %v643_v21 = vadd.f32 %v1580_v35, %v642_v11 }
  0xa7   : > { %vm680_vm11 = vcmp.gt.f32.partialorder %v525_v16, 0.0  ;;  %v744_v18 = vmul.f32 0.2, %v525_v16  ;;  %v775_v30 = vmul.f32 0.2, %v603_v20  ;;  %vm711_vm13 = vcmp.gt.f32.partialorder %v603_v20, 0.0 }
  0xa8   : > { %vm696_vm12 = vcmp.gt.f32.partialorder %v565_v17, 0.0  ;;  %v760_v19 = vmul.f32 0.2, %v565_v17  ;;  %v791_v31 = vmul.f32 0.2, %v643_v21  ;;  %vm727_vm14 = vcmp.gt.f32.partialorder %v643_v21, 0.0 }
  0xa9   : > { %v808_v24 = vsel %vm680_vm11, %v525_v16, %v744_v18  ;;  %v839_v39 = vsel %vm711_vm13, %v603_v20, %v775_v30 }
  0xaa   : > { %v824_v25 = vsel %vm696_vm12, %v565_v17, %v760_v19  ;;  %v1269_v26 = vpack.c.bf16 %v808_v24, %v807_v22  ;;  %v855_v40 = vsel %vm727_vm14, %v643_v21, %v791_v31 }
  0xab   : > { %v1309_v27 = vpack.c.bf16 %v824_v25, %v823_v23 }
  0xac   : > { %v604_v28 = vpop.f32.mrf.mxu2  ;;  %1421 = vst [vmem:[%s1593_s25 + $0x8] sm:$0xff] %v1269_v26   ;;  %v527_v34 = vpop.f32.mrf.mxu0 }
  0xad   : > { %v644_v29 = vpop.f32.mrf.mxu3  ;;  %v605_v32 = vadd.f32 %v1580_v35, %v604_v28  ;;  %v567_v36 = vpop.f32.mrf.mxu1  ;;  %1429 = vst [vmem:[%s1593_s25 + $0x48] sm:$0xff] %v1309_v27   ;;  %v528_v45 = vadd.f32 %v1580_v35, %v527_v34 }
  0xae   : > { %v645_v33 = vadd.f32 %v1580_v35, %v644_v29  ;;  %v568_v46 = vadd.f32 %v1580_v35, %v567_v36 }
  0xaf   : > { %vm712_vm15 = vcmp.gt.f32.partialorder %v605_v32, 0.0  ;;  %v776_v37 = vmul.f32 0.2, %v605_v32  ;;  %v745_v51 = vmul.f32 0.2, %v528_v45  ;;  %vm681_vm1 = vcmp.gt.f32.partialorder %v528_v45, 0.0 }
  0xb0   : > { %vm728_vm0 = vcmp.gt.f32.partialorder %v645_v33, 0.0  ;;  %v792_v38 = vmul.f32 0.2, %v645_v33  ;;  %v761_v52 = vmul.f32 0.2, %v568_v46  ;;  %vm697_vm2 = vcmp.gt.f32.partialorder %v568_v46, 0.0 }
  0xb1   : > { %v840_v41 = vsel %vm712_vm15, %v605_v32, %v776_v37  ;;  %v809_v59 = vsel %vm681_vm1, %v528_v45, %v745_v51 }
  0xb2   : > { %v856_v42 = vsel %vm728_vm0, %v645_v33, %v792_v38  ;;  %v1349_v43 = vpack.c.bf16 %v840_v41, %v839_v39  ;;  %v825_v60 = vsel %vm697_vm2, %v568_v46, %v761_v52 }
  0xb3   : > { %v1389_v44 = vpack.c.bf16 %v856_v42, %v855_v40 }
  0xb4   : > { %1437 = vst [vmem:[%s1593_s25 + $0x88] sm:$0xff] %v1349_v43   ;;  %v607_v47 = vpop.f32.mrf.mxu2  ;;  %v529_v49 = vpop.f32.mrf.mxu0 }
  0xb5   : > { %v647_v48 = vpop.f32.mrf.mxu3  ;;  %1445 = vst [vmem:[%s1593_s25 + $0xc8] sm:$0xff] %v1389_v44   ;;  %v569_v50 = vpop.f32.mrf.mxu1  ;;  %v530_v53 = vadd.f32 %v1580_v35, %v529_v49  ;;  %v608_v57 = vadd.f32 %v1580_v35, %v607_v47 }
  0xb6   : > { %v570_v54 = vadd.f32 %v1580_v35, %v569_v50  ;;  %v648_v58 = vadd.f32 %v1580_v35, %v647_v48 }
  0xb7   : > { %vm682_vm3 = vcmp.gt.f32.partialorder %v530_v53, 0.0  ;;  %v746_v55 = vmul.f32 0.2, %v530_v53  ;;  %v777_v3 = vmul.f32 0.2, %v608_v57  ;;  %vm713_vm5 = vcmp.gt.f32.partialorder %v608_v57, 0.0 }
  0xb8   : > { %vm698_vm4 = vcmp.gt.f32.partialorder %v570_v54, 0.0  ;;  %v762_v56 = vmul.f32 0.2, %v570_v54  ;;  %v793_v4 = vmul.f32 0.2, %v648_v58  ;;  %vm729_vm6 = vcmp.gt.f32.partialorder %v648_v58, 0.0 }
  0xb9   : > { %v810_v61 = vsel %vm682_vm3, %v530_v53, %v746_v55  ;;  %v841_v11 = vsel %vm713_vm5, %v608_v57, %v777_v3 }
  0xba   : > { %v826_v62 = vsel %vm698_vm4, %v570_v54, %v762_v56  ;;  %v1274_v63 = vpack.c.bf16 %v810_v61, %v809_v59  ;;  %v857_v12 = vsel %vm729_vm6, %v648_v58, %v793_v4 }
  0xbb   : > { %v1314_v0 = vpack.c.bf16 %v826_v62, %v825_v60 }
  0xbc   : > { %v609_v1 = vpop.f32.mrf.mxu2  ;;  %1422 = vst [vmem:[%s1593_s25 + $0x10] sm:$0xff] %v1274_v63   ;;  %v532_v7 = vpop.f32.mrf.mxu0 }
  0xbd   : > { %v649_v2 = vpop.f32.mrf.mxu3  ;;  %v610_v5 = vadd.f32 %v1580_v35, %v609_v1  ;;  %v572_v8 = vpop.f32.mrf.mxu1  ;;  %1430 = vst [vmem:[%s1593_s25 + $0x50] sm:$0xff] %v1314_v0   ;;  %v533_v17 = vadd.f32 %v1580_v35, %v532_v7 }
  0xbe   : > { %v650_v6 = vadd.f32 %v1580_v35, %v649_v2  ;;  %v573_v18 = vadd.f32 %v1580_v35, %v572_v8 }
  0xbf   : > { %vm714_vm7 = vcmp.gt.f32.partialorder %v610_v5, 0.0  ;;  %v778_v9 = vmul.f32 0.2, %v610_v5  ;;  %v747_v23 = vmul.f32 0.2, %v533_v17  ;;  %vm683_vm9 = vcmp.gt.f32.partialorder %v533_v17, 0.0 }
  0xc0   : > { %vm730_vm8 = vcmp.gt.f32.partialorder %v650_v6, 0.0  ;;  %v794_v10 = vmul.f32 0.2, %v650_v6  ;;  %v763_v24 = vmul.f32 0.2, %v573_v18  ;;  %vm699_vm10 = vcmp.gt.f32.partialorder %v573_v18, 0.0 }
  0xc1   : > { %v842_v13 = vsel %vm714_vm7, %v610_v5, %v778_v9  ;;  %v811_v31 = vsel %vm683_vm9, %v533_v17, %v747_v23 }
  0xc2   : > { %v858_v14 = vsel %vm730_vm8, %v650_v6, %v794_v10  ;;  %v1354_v15 = vpack.c.bf16 %v842_v13, %v841_v11  ;;  %v827_v32 = vsel %vm699_vm10, %v573_v18, %v763_v24 }
  0xc3   : > { %v1394_v16 = vpack.c.bf16 %v858_v14, %v857_v12 }
  0xc4   : > { %1438 = vst [vmem:[%s1593_s25 + $0x90] sm:$0xff] %v1354_v15   ;;  %v612_v19 = vpop.f32.mrf.mxu2  ;;  %v534_v21 = vpop.f32.mrf.mxu0 }
  0xc5   : > { %v652_v20 = vpop.f32.mrf.mxu3  ;;  %1446 = vst [vmem:[%s1593_s25 + $0xd0] sm:$0xff] %v1394_v16   ;;  %v574_v22 = vpop.f32.mrf.mxu1  ;;  %v535_v25 = vadd.f32 %v1580_v35, %v534_v21  ;;  %v613_v29 = vadd.f32 %v1580_v35, %v612_v19 }
  0xc6   : > { %v575_v26 = vadd.f32 %v1580_v35, %v574_v22  ;;  %v653_v30 = vadd.f32 %v1580_v35, %v652_v20 }
  0xc7   : > { %vm684_vm11 = vcmp.gt.f32.partialorder %v535_v25, 0.0  ;;  %v748_v27 = vmul.f32 0.2, %v535_v25  ;;  %v779_v40 = vmul.f32 0.2, %v613_v29  ;;  %vm715_vm13 = vcmp.gt.f32.partialorder %v613_v29, 0.0 }
  0xc8   : > { %vm700_vm12 = vcmp.gt.f32.partialorder %v575_v26, 0.0  ;;  %v764_v28 = vmul.f32 0.2, %v575_v26  ;;  %v795_v41 = vmul.f32 0.2, %v653_v30  ;;  %vm731_vm14 = vcmp.gt.f32.partialorder %v653_v30, 0.0 }
  0xc9   : > { %v812_v33 = vsel %vm684_vm11, %v535_v25, %v748_v27  ;;  %v843_v48 = vsel %vm715_vm13, %v613_v29, %v779_v40 }
  0xca   : > { %v828_v34 = vsel %vm700_vm12, %v575_v26, %v764_v28  ;;  %v1279_v36 = vpack.c.bf16 %v812_v33, %v811_v31  ;;  %v859_v49 = vsel %vm731_vm14, %v653_v30, %v795_v41 }
  0xcb   : > { %v1319_v37 = vpack.c.bf16 %v828_v34, %v827_v32 }
  0xcc   : > { %v614_v38 = vpop.f32.mrf.mxu2  ;;  %1423 = vst [vmem:[%s1593_s25 + $0x18] sm:$0xff] %v1279_v36   ;;  %v537_v44 = vpop.f32.mrf.mxu0 }
  0xcd   : > { %v654_v39 = vpop.f32.mrf.mxu3  ;;  %v615_v42 = vadd.f32 %v1580_v35, %v614_v38  ;;  %v577_v45 = vpop.f32.mrf.mxu1  ;;  %1431 = vst [vmem:[%s1593_s25 + $0x58] sm:$0xff] %v1319_v37   ;;  %v538_v54 = vadd.f32 %v1580_v35, %v537_v44 }
  0xce   : > { %v655_v43 = vadd.f32 %v1580_v35, %v654_v39  ;;  %v578_v55 = vadd.f32 %v1580_v35, %v577_v45 }
  0xcf   : > { %vm716_vm15 = vcmp.gt.f32.partialorder %v615_v42, 0.0  ;;  %v780_v46 = vmul.f32 0.2, %v615_v42  ;;  %v749_v60 = vmul.f32 0.2, %v538_v54  ;;  %vm685_vm1 = vcmp.gt.f32.partialorder %v538_v54, 0.0 }
  0xd0   : > { %vm732_vm0 = vcmp.gt.f32.partialorder %v655_v43, 0.0  ;;  %v796_v47 = vmul.f32 0.2, %v655_v43  ;;  %v765_v61 = vmul.f32 0.2, %v578_v55  ;;  %vm701_vm2 = vcmp.gt.f32.partialorder %v578_v55, 0.0 }
  0xd1   : > { %v844_v50 = vsel %vm716_vm15, %v615_v42, %v780_v46  ;;  %v813_v4 = vsel %vm685_vm1, %v538_v54, %v749_v60 }
  0xd2   : > { %v860_v51 = vsel %vm732_vm0, %v655_v43, %v796_v47  ;;  %v1359_v52 = vpack.c.bf16 %v844_v50, %v843_v48  ;;  %v829_v5 = vsel %vm701_vm2, %v578_v55, %v765_v61 }
  0xd3   : > { %v1399_v53 = vpack.c.bf16 %v860_v51, %v859_v49 }
  0xd4   : > { %1439 = vst [vmem:[%s1593_s25 + $0x98] sm:$0xff] %v1359_v52   ;;  %v617_v56 = vpop.f32.mrf.mxu2  ;;  %v539_v58 = vpop.f32.mrf.mxu0 }
  0xd5   : > { %v657_v57 = vpop.f32.mrf.mxu3  ;;  %1447 = vst [vmem:[%s1593_s25 + $0xd8] sm:$0xff] %v1399_v53   ;;  %v579_v59 = vpop.f32.mrf.mxu1  ;;  %v540_v62 = vadd.f32 %v1580_v35, %v539_v58  ;;  %v618_v2 = vadd.f32 %v1580_v35, %v617_v56 }
  0xd6   : > { %v580_v63 = vadd.f32 %v1580_v35, %v579_v59  ;;  %v658_v3 = vadd.f32 %v1580_v35, %v657_v57 }
  0xd7   : > { %vm686_vm3 = vcmp.gt.f32.partialorder %v540_v62, 0.0  ;;  %v750_v0 = vmul.f32 0.2, %v540_v62  ;;  %v781_v12 = vmul.f32 0.2, %v618_v2  ;;  %vm717_vm5 = vcmp.gt.f32.partialorder %v618_v2, 0.0 }
  0xd8   : > { %vm702_vm4 = vcmp.gt.f32.partialorder %v580_v63, 0.0  ;;  %v766_v1 = vmul.f32 0.2, %v580_v63  ;;  %v797_v13 = vmul.f32 0.2, %v658_v3  ;;  %vm733_vm6 = vcmp.gt.f32.partialorder %v658_v3, 0.0 }
  0xd9   : > { %v814_v6 = vsel %vm686_vm3, %v540_v62, %v750_v0  ;;  %v845_v20 = vsel %vm717_vm5, %v618_v2, %v781_v12 }
  0xda   : > { %v830_v7 = vsel %vm702_vm4, %v580_v63, %v766_v1  ;;  %v1284_v8 = vpack.c.bf16 %v814_v6, %v813_v4  ;;  %v861_v21 = vsel %vm733_vm6, %v658_v3, %v797_v13 }
  0xdb   : > { %v1324_v9 = vpack.c.bf16 %v830_v7, %v829_v5 }
  0xdc   : > { %v619_v10 = vpop.f32.mrf.mxu2  ;;  %1424 = vst [vmem:[%s1593_s25 + $0x20] sm:$0xff] %v1284_v8   ;;  %v542_v16 = vpop.f32.mrf.mxu0 }
  0xdd   : > { %v659_v11 = vpop.f32.mrf.mxu3  ;;  %v620_v14 = vadd.f32 %v1580_v35, %v619_v10  ;;  %v582_v17 = vpop.f32.mrf.mxu1  ;;  %1432 = vst [vmem:[%s1593_s25 + $0x60] sm:$0xff] %v1324_v9   ;;  %v543_v26 = vadd.f32 %v1580_v35, %v542_v16 }
  0xde   : > { %v660_v15 = vadd.f32 %v1580_v35, %v659_v11  ;;  %v583_v27 = vadd.f32 %v1580_v35, %v582_v17 }
  0xdf   : > { %vm718_vm7 = vcmp.gt.f32.partialorder %v620_v14, 0.0  ;;  %v782_v18 = vmul.f32 0.2, %v620_v14  ;;  %v751_v32 = vmul.f32 0.2, %v543_v26  ;;  %vm687_vm9 = vcmp.gt.f32.partialorder %v543_v26, 0.0 }
  0xe0   : > { %vm734_vm8 = vcmp.gt.f32.partialorder %v660_v15, 0.0  ;;  %v798_v19 = vmul.f32 0.2, %v660_v15  ;;  %v767_v33 = vmul.f32 0.2, %v583_v27  ;;  %vm703_vm10 = vcmp.gt.f32.partialorder %v583_v27, 0.0 }
  0xe1   : > { %v846_v22 = vsel %vm718_vm7, %v620_v14, %v782_v18  ;;  %v815_v41 = vsel %vm687_vm9, %v543_v26, %v751_v32 }
  0xe2   : > { %v862_v23 = vsel %vm734_vm8, %v660_v15, %v798_v19  ;;  %v1364_v24 = vpack.c.bf16 %v846_v22, %v845_v20  ;;  %v831_v42 = vsel %vm703_vm10, %v583_v27, %v767_v33 }
  0xe3   : > { %v1404_v25 = vpack.c.bf16 %v862_v23, %v861_v21 }
  0xe4   : > { %1440 = vst [vmem:[%s1593_s25 + $0xa0] sm:$0xff] %v1364_v24   ;;  %v622_v28 = vpop.f32.mrf.mxu2  ;;  %v544_v30 = vpop.f32.mrf.mxu0 }
  0xe5   : > { %v662_v29 = vpop.f32.mrf.mxu3  ;;  %1448 = vst [vmem:[%s1593_s25 + $0xe0] sm:$0xff] %v1404_v25   ;;  %v584_v31 = vpop.f32.mrf.mxu1  ;;  %v545_v34 = vadd.f32 %v1580_v35, %v544_v30  ;;  %v623_v39 = vadd.f32 %v1580_v35, %v622_v28 }
  0xe6   : > { %v585_v36 = vadd.f32 %v1580_v35, %v584_v31  ;;  %v663_v40 = vadd.f32 %v1580_v35, %v662_v29 }
  0xe7   : > { %vm688_vm11 = vcmp.gt.f32.partialorder %v545_v34, 0.0  ;;  %v752_v37 = vmul.f32 0.2, %v545_v34  ;;  %v783_v49 = vmul.f32 0.2, %v623_v39  ;;  %vm719_vm13 = vcmp.gt.f32.partialorder %v623_v39, 0.0 }
  0xe8   : > { %vm704_vm12 = vcmp.gt.f32.partialorder %v585_v36, 0.0  ;;  %v768_v38 = vmul.f32 0.2, %v585_v36  ;;  %v799_v50 = vmul.f32 0.2, %v663_v40  ;;  %vm735_vm14 = vcmp.gt.f32.partialorder %v663_v40, 0.0 }
  0xe9   : > { %v816_v43 = vsel %vm688_vm11, %v545_v34, %v752_v37  ;;  %v847_v57 = vsel %vm719_vm13, %v623_v39, %v783_v49 }
  0xea   : > { %v832_v44 = vsel %vm704_vm12, %v585_v36, %v768_v38  ;;  %v1289_v45 = vpack.c.bf16 %v816_v43, %v815_v41  ;;  %v863_v58 = vsel %vm735_vm14, %v663_v40, %v799_v50 }
  0xeb   : > { %v1329_v46 = vpack.c.bf16 %v832_v44, %v831_v42 }
  0xec   : > { %v624_v47 = vpop.f32.mrf.mxu2  ;;  %1425 = vst [vmem:[%s1593_s25 + $0x28] sm:$0xff] %v1289_v45   ;;  %v547_v53 = vpop.f32.mrf.mxu0 }
  0xed   : > { %v664_v48 = vpop.f32.mrf.mxu3  ;;  %v625_v51 = vadd.f32 %v1580_v35, %v624_v47  ;;  %v587_v54 = vpop.f32.mrf.mxu1  ;;  %1433 = vst [vmem:[%s1593_s25 + $0x68] sm:$0xff] %v1329_v46   ;;  %v548_v63 = vadd.f32 %v1580_v35, %v547_v53 }
  0xee   : > { %v665_v52 = vadd.f32 %v1580_v35, %v664_v48  ;;  %v588_v0 = vadd.f32 %v1580_v35, %v587_v54 }
  0xef   : > { %vm720_vm15 = vcmp.gt.f32.partialorder %v625_v51, 0.0  ;;  %v784_v55 = vmul.f32 0.2, %v625_v51  ;;  %v753_v5 = vmul.f32 0.2, %v548_v63  ;;  %vm689_vm1 = vcmp.gt.f32.partialorder %v548_v63, 0.0 }
  0xf0   : > { %vm736_vm0 = vcmp.gt.f32.partialorder %v665_v52, 0.0  ;;  %v800_v56 = vmul.f32 0.2, %v665_v52  ;;  %v769_v6 = vmul.f32 0.2, %v588_v0  ;;  %vm705_vm2 = vcmp.gt.f32.partialorder %v588_v0, 0.0 }
  0xf1   : > { %v848_v59 = vsel %vm720_vm15, %v625_v51, %v784_v55  ;;  %v817_v13 = vsel %vm689_vm1, %v548_v63, %v753_v5 }
  0xf2   : > { %v864_v60 = vsel %vm736_vm0, %v665_v52, %v800_v56  ;;  %v1369_v61 = vpack.c.bf16 %v848_v59, %v847_v57  ;;  %v833_v14 = vsel %vm705_vm2, %v588_v0, %v769_v6 }
  0xf3   : > { %v1409_v62 = vpack.c.bf16 %v864_v60, %v863_v58 }
  0xf4   : > { %1441 = vst [vmem:[%s1593_s25 + $0xa8] sm:$0xff] %v1369_v61   ;;  %v627_v1 = vpop.f32.mrf.mxu2  ;;  %v549_v3 = vpop.f32.mrf.mxu0 }
  0xf5   : > { %v667_v2 = vpop.f32.mrf.mxu3  ;;  %1449 = vst [vmem:[%s1593_s25 + $0xe8] sm:$0xff] %v1409_v62   ;;  %v589_v4 = vpop.f32.mrf.mxu1  ;;  %v550_v7 = vadd.f32 %v1580_v35, %v549_v3  ;;  %v628_v11 = vadd.f32 %v1580_v35, %v627_v1 }
  0xf6   : > { %v590_v8 = vadd.f32 %v1580_v35, %v589_v4  ;;  %v668_v12 = vadd.f32 %v1580_v35, %v667_v2 }
  0xf7   : > { %vm690_vm3 = vcmp.gt.f32.partialorder %v550_v7, 0.0  ;;  %v754_v9 = vmul.f32 0.2, %v550_v7  ;;  %v785_v21 = vmul.f32 0.2, %v628_v11  ;;  %vm721_vm5 = vcmp.gt.f32.partialorder %v628_v11, 0.0 }
  0xf8   : > { %vm706_vm4 = vcmp.gt.f32.partialorder %v590_v8, 0.0  ;;  %v770_v10 = vmul.f32 0.2, %v590_v8  ;;  %v801_v22 = vmul.f32 0.2, %v668_v12  ;;  %vm737_vm6 = vcmp.gt.f32.partialorder %v668_v12, 0.0 }
  0xf9   : > { %v818_v15 = vsel %vm690_vm3, %v550_v7, %v754_v9  ;;  %v849_v29 = vsel %vm721_vm5, %v628_v11, %v785_v21 }
  0xfa   : > { %v834_v16 = vsel %vm706_vm4, %v590_v8, %v770_v10  ;;  %v1294_v17 = vpack.c.bf16 %v818_v15, %v817_v13  ;;  %v865_v30 = vsel %vm737_vm6, %v668_v12, %v801_v22 }
  0xfb   : > { %v1334_v18 = vpack.c.bf16 %v834_v16, %v833_v14 }
  0xfc   : > { %v629_v19 = vpop.f32.mrf.mxu2  ;;  %1426 = vst [vmem:[%s1593_s25 + $0x30] sm:$0xff] %v1294_v17   ;;  %v552_v25 = vpop.f32.mrf.mxu0 }
  0xfd   : > { %v669_v20 = vpop.f32.mrf.mxu3  ;;  %v630_v23 = vadd.f32 %v1580_v35, %v629_v19  ;;  %v592_v26 = vpop.f32.mrf.mxu1  ;;  %1434 = vst [vmem:[%s1593_s25 + $0x70] sm:$0xff] %v1334_v18   ;;  %v553_v36 = vadd.f32 %v1580_v35, %v552_v25 }
  0xfe   : > { %v670_v24 = vadd.f32 %v1580_v35, %v669_v20  ;;  %v593_v37 = vadd.f32 %v1580_v35, %v592_v26 }
  0xff   : > { %vm722_vm7 = vcmp.gt.f32.partialorder %v630_v23, 0.0  ;;  %v786_v27 = vmul.f32 0.2, %v630_v23  ;;  %v755_v42 = vmul.f32 0.2, %v553_v36  ;;  %vm691_vm9 = vcmp.gt.f32.partialorder %v553_v36, 0.0 }
 0x100   : > { %vm738_vm8 = vcmp.gt.f32.partialorder %v670_v24, 0.0  ;;  %v802_v28 = vmul.f32 0.2, %v670_v24  ;;  %v771_v43 = vmul.f32 0.2, %v593_v37  ;;  %vm707_vm10 = vcmp.gt.f32.partialorder %v593_v37, 0.0 }
 0x101   : > { %v850_v31 = vsel %vm722_vm7, %v630_v23, %v786_v27  ;;  %v819_v50 = vsel %vm691_vm9, %v553_v36, %v755_v42 }
 0x102   : > { %v866_v32 = vsel %vm738_vm8, %v670_v24, %v802_v28  ;;  %v1374_v33 = vpack.c.bf16 %v850_v31, %v849_v29  ;;  %v835_v51 = vsel %vm707_vm10, %v593_v37, %v771_v43 }
 0x103   : > { %v1414_v34 = vpack.c.bf16 %v866_v32, %v865_v30 }
 0x104   : > { %1442 = vst [vmem:[%s1593_s25 + $0xb0] sm:$0xff] %v1374_v33   ;;  %v632_v38 = vpop.f32.mrf.mxu2  ;;  %v554_v40 = vpop.f32.mrf.mxu0 }
 0x105   : > { %v672_v39 = vpop.f32.mrf.mxu3  ;;  %1450 = vst [vmem:[%s1593_s25 + $0xf0] sm:$0xff] %v1414_v34   ;;  %v594_v41 = vpop.f32.mrf.mxu1  ;;  %v555_v44 = vadd.f32 %v1580_v35, %v554_v40  ;;  %v633_v48 = vadd.f32 %v1580_v35, %v632_v38 }
 0x106   : > { %v595_v45 = vadd.f32 %v1580_v35, %v594_v41  ;;  %v673_v49 = vadd.f32 %v1580_v35, %v672_v39 }
 0x107   : > { %vm692_vm11 = vcmp.gt.f32.partialorder %v555_v44, 0.0  ;;  %v756_v46 = vmul.f32 0.2, %v555_v44  ;;  %v787_v58 = vmul.f32 0.2, %v633_v48  ;;  %vm723_vm13 = vcmp.gt.f32.partialorder %v633_v48, 0.0 }
 0x108   : > { %vm708_vm12 = vcmp.gt.f32.partialorder %v595_v45, 0.0  ;;  %v772_v47 = vmul.f32 0.2, %v595_v45  ;;  %v803_v59 = vmul.f32 0.2, %v673_v49  ;;  %vm739_vm14 = vcmp.gt.f32.partialorder %v673_v49, 0.0 }
 0x109   : > { %v820_v52 = vsel %vm692_vm11, %v555_v44, %v756_v46  ;;  %v851_v0 = vsel %vm723_vm13, %v633_v48, %v787_v58 }
 0x10a   : > { %v836_v53 = vsel %vm708_vm12, %v595_v45, %v772_v47  ;;  %v1299_v54 = vpack.c.bf16 %v820_v52, %v819_v50  ;;  %v867_v1 = vsel %vm739_vm14, %v673_v49, %v803_v59 }
 0x10b   : > { %v1339_v55 = vpack.c.bf16 %v836_v53, %v835_v51 }
 0x10c   : > { %v634_v56 = vpop.f32.mrf.mxu2  ;;  %1427 = vst [vmem:[%s1593_s25 + $0x38] sm:$0xff] %v1299_v54  }
 0x10d   : > { %v674_v57 = vpop.f32.mrf.mxu3  ;;  %v635_v60 = vadd.f32 %v1580_v35, %v634_v56  ;;  %1435 = vst [vmem:[%s1593_s25 + $0x78] sm:$0xff] %v1339_v55  }
 0x10e   : > { %v675_v61 = vadd.f32 %v1580_v35, %v674_v57 }
 0x10f   : > { %vm724_vm15 = vcmp.gt.f32.partialorder %v635_v60, 0.0  ;;  %v788_v62 = vmul.f32 0.2, %v635_v60 }
 0x110   : > { %vm740_vm0 = vcmp.gt.f32.partialorder %v675_v61, 0.0  ;;  %v804_v63 = vmul.f32 0.2, %v675_v61 }
 0x111   : > { %v852_v2 = vsel %vm724_vm15, %v635_v60, %v788_v62 }
 0x112   : > { %v868_v3 = vsel %vm740_vm0, %v675_v61, %v804_v63  ;;  %v1379_v4 = vpack.c.bf16 %v852_v2, %v851_v0 }
 0x113   : > { %v1419_v5 = vpack.c.bf16 %v868_v3, %v867_v1 }
 0x114   : > { %1443 = vst [vmem:[%s1593_s25 + $0xb8] sm:$0xff] %v1379_v4  }
 0x115   : > { %1451 = vst [vmem:[%s1593_s25 + $0xf8] sm:$0xff] %v1419_v5  }
 0x116 PF: > { %s13_s12 = sadd.s32 1, %s1470_s12  }
 0x117   : > { %p10_p4 = scmp.ge.s32.totalorder %s13_s12, 6  }
 0x119   :  { %12 = sbr.rel (!%p10_p4) target bundleno = 1 (0x1), region = 62 }

// kernel: critic_forward.5
= control target key start
LH: loop header
LB: loop body
LE: loop exit
PB: predicated region body
PF: predicated region fallthrough
CT: control target
= control target key end

     0   :  { %s1321_s15 = smov 0   ;;  %s1323_s16 = smov 0   ;;  %s1709_s0 = inlined_call_operand.vmem [shape: bf16[512,128], index: 0, kind: input, shape index: {}]   ;;  %s1710_s1 = inlined_call_operand.vmem [shape: bf16[128,128], index: 1, kind: input, shape index: {}]   ;;  %s1711_s2 = inlined_call_operand.vmem [shape: f32[1,128], index: 2, kind: input, shape index: {}]   ;;  %s1712_s3 = inlined_call_operand.vmem [shape: f32[1,128], index: 3, kind: input, shape index: {}]   ;;  %s1713_s4 = inlined_call_operand.vmem [shape: bf16[512,128], index: 4, kind: output, shape index: {}]  }
   0x1   :  { %s1325_s17 = smov 0   ;;  %s1327_s18 = smov 0  }
   0x2   :  { %s1329_s19 = smov 0  }
   0x3 LB: > { %s23_s20 = sadd.s32 1, %s1285_s17  ;;  %s26_s21 = sadd.s32 1, %s1289_s18  ;;  %s1293_s19 = sphi %s1329_s19, %s14_s19   ;;  %s1289_s18 = sphi %s1327_s18, %s1717_s18   ;;  %s1285_s17 = sphi %s1325_s17, %s1716_s17   ;;  %s1281_s16 = sphi %s1323_s16, %s1715_s16   ;;  %s1277_s15 = sphi %s1321_s15, %s1714_s15  }
   0x4   : > { %p24_p0 = scmp.ge.s32.totalorder %s23_s20, 2  ;;  %p960_p1 = scmp.ge.s32.totalorder %s1293_s19, 1 }
   0x5   : > { %p177_p2 = scmp.lt.s32.totalorder %s1293_s19, 5 }
   0x6   : > { %s1719_s20 = smov (%p24_p0, %s23_s20), 0  ;;  %s1721_s21 = smov (!%p24_p0, %s26_s21), %s1289_s18 }
   0x7   : > { %p178_p3 = pnand %p960_p1, %p177_p2  ;;  %p28_p4 = scmp.ge.s32.totalorder %s1721_s21, 2 }
   0x8   : > { %s210_s22 = smul.u32 (!%p178_p3), %s1277_s15, %s1281_s16  ;;  %s961_s10 = sshll.u32 (!%p178_p3), %s1277_s15, 5 }
   0x9   : > { %s1723_s21 = smov (%p28_p4, %s1721_s21), 0  ;;  %181 = sbr.rel (%p178_p3) target bundleno = 421 (0x1a5), region = 36 }
   0xa   : > { %s963_s25 = sshll.u32 (!%p178_p3), %s210_s22, 5  ;;  %p205_p6 = scmp.lt.s32.totalorder (!%p178_p3), %s961_s10, 63 }
   0xb   : > { %p212_p5 = scmp.lt.s32.totalorder (!%p178_p3), %s963_s25, 63  ;;  %p1061_p7 = scmp.ne.s32.totalorder (!%p178_p3), %s1281_s16, 0 }
   0xe   : > { %v1090_v0 = vld [vmem:[%s1710_s1 + $0x38] sm:$0xff]  ;;  %v1089_v1 = vld [vmem:[%s1710_s1 + $0x30] sm:$0xff]  ;;  %s1725_s25 = smov (!%p212_p5, %s963_s25), 63  ;;  %v1088_v2 = vld [vmem:[%s1710_s1 + $0x28] sm:$0xff]  ;;  %s1727_s10 = smov (!%p205_p6, %s961_s10), 63 }
   0xf   : > { %410 = vmatpush.bf16.msra.mxu0 %v1090_v0  ;;  %1186 = vmatpush.bf16.msra.mxu1 %v1090_v0  ;;  %s964_s30 = sshll.u32 %s1725_s25, 2  ;;  %v1087_v3 = vld [vmem:[%s1710_s1 + $0x20] sm:$0xff]  ;;  %v1086_v4 = vld [vmem:[%s1710_s1 + $0x18] sm:$0xff]  ;;  %v1085_v5 = vld [vmem:[%s1710_s1 + $0x10] sm:$0xff]  ;;  %s962_s24 = sshll.u32 %s1727_s10, 2 }
  0x10   : > { %1187 = vmatpush.bf16.msra.mxu2 %v1090_v0  ;;  %1188 = vmatpush.bf16.msra.mxu3 %v1090_v0  ;;  %s1369_s7 = scalar_lea.vmem %s1713_s4, %s964_s30  ;;  %v1084_v6 = vld [vmem:[%s1710_s1 + $0x8] sm:$0xff]  ;;  %v1083_v7 = vld [vmem:[%s1710_s1] sm:$0xff]  ;;  %s1390_s29 = scalar_lea.vmem %s1709_s0, %s962_s24 }
  0x11   : > { %v1067_v8 = vld [vmem:[%s1390_s29] sm:$0xff]  ;;  %v1068_v12 = vld [vmem:[%s1390_s29 + $0x8] sm:$0xff]  ;;  %v1069_v16 = vld [vmem:[%s1390_s29 + $0x10] sm:$0xff]  ;;  %p1062_p8 = scmp.ne.s32.totalorder (!%p1061_p7), %s1277_s15, 0 }
  0x12   : > { %v1071_v9 = vld [vmem:[%s1390_s29 + $0x20] sm:$0xff]  ;;  %v1072_v13 = vld [vmem:[%s1390_s29 + $0x28] sm:$0xff]  ;;  %v1073_v17 = vld [vmem:[%s1390_s29 + $0x30] sm:$0xff] }
  0x13   : > { %411 = vmatpush.bf16.msra.mxu0 %v1089_v1  ;;  %1189 = vmatpush.bf16.msra.mxu1 %v1089_v1  ;;  %v1075_v10 = vld [vmem:[%s1390_s29 + $0x40] sm:$0xff]  ;;  %v1076_v14 = vld [vmem:[%s1390_s29 + $0x48] sm:$0xff]  ;;  %v1077_v18 = vld [vmem:[%s1390_s29 + $0x50] sm:$0xff] }
  0x14   : > { %1190 = vmatpush.bf16.msra.mxu2 %v1089_v1  ;;  %1191 = vmatpush.bf16.msra.mxu3 %v1089_v1  ;;  %v1079_v11 = vld [vmem:[%s1390_s29 + $0x60] sm:$0xff]  ;;  %v1080_v15 = vld [vmem:[%s1390_s29 + $0x68] sm:$0xff]  ;;  %v1081_v19 = vld [vmem:[%s1390_s29 + $0x70] sm:$0xff] }
  0x15   : > { %v1070_v20 = vld [vmem:[%s1390_s29 + $0x18] sm:$0xff] }
  0x16   : > { %v1074_v21 = vld [vmem:[%s1390_s29 + $0x38] sm:$0xff] }
  0x17   : > { %412 = vmatpush.bf16.msra.mxu0 %v1088_v2  ;;  %1192 = vmatpush.bf16.msra.mxu1 %v1088_v2  ;;  %v1078_v22 = vld [vmem:[%s1390_s29 + $0x58] sm:$0xff] }
  0x18   : > { %1193 = vmatpush.bf16.msra.mxu2 %v1088_v2  ;;  %1194 = vmatpush.bf16.msra.mxu3 %v1088_v2  ;;  %v1082_v23 = vld [vmem:[%s1390_s29 + $0x78] sm:$0xff] }
  0x1b   : > { %413 = vmatpush.bf16.msra.mxu0 %v1087_v3  ;;  %1195 = vmatpush.bf16.msra.mxu1 %v1087_v3 }
  0x1c   : > { %1196 = vmatpush.bf16.msra.mxu2 %v1087_v3  ;;  %1197 = vmatpush.bf16.msra.mxu3 %v1087_v3 }
  0x1f   : > { %414 = vmatpush.bf16.msra.mxu0 %v1086_v4  ;;  %1198 = vmatpush.bf16.msra.mxu1 %v1086_v4 }
  0x20   : > { %1199 = vmatpush.bf16.msra.mxu2 %v1086_v4  ;;  %1200 = vmatpush.bf16.msra.mxu3 %v1086_v4 }
  0x23   : > { %415 = vmatpush.bf16.msra.mxu0 %v1085_v5  ;;  %1201 = vmatpush.bf16.msra.mxu1 %v1085_v5 }
  0x24   : > { %1202 = vmatpush.bf16.msra.mxu2 %v1085_v5  ;;  %1203 = vmatpush.bf16.msra.mxu3 %v1085_v5 }
  0x27   : > { %416 = vmatpush.bf16.msra.mxu0 %v1084_v6  ;;  %1204 = vmatpush.bf16.msra.mxu1 %v1084_v6 }
  0x28   : > { %1205 = vmatpush.bf16.msra.mxu2 %v1084_v6  ;;  %1206 = vmatpush.bf16.msra.mxu3 %v1084_v6 }
  0x2b   : > { %417 = vmatpush.bf16.msra.mxu0 %v1083_v7  ;;  %1207 = vmatpush.bf16.msra.mxu1 %v1083_v7 }
  0x2c   : > { %1208 = vmatpush.bf16.msra.mxu2 %v1083_v7  ;;  %1209 = vmatpush.bf16.msra.mxu3 %v1083_v7 }
  0x2e   : > { %418 = vmatmul.bf16.vlgmr.msra.gmra.mxu0 %v1067_v8  ;;  %438 = vmatmul.bf16.vlgmr.msra.gmra.mxu1 %v1071_v9 }
  0x2f   : > { %458 = vmatmul.bf16.vlgmr.msra.gmra.mxu2 %v1075_v10  ;;  %478 = vmatmul.bf16.vlgmr.msra.gmra.mxu3 %v1079_v11 }
  0x3e   : > { %423 = vmatmul.bf16.gmra.mxu0 %v1068_v12  ;;  %443 = vmatmul.bf16.gmra.mxu1 %v1072_v13 }
  0x3f   : > { %463 = vmatmul.bf16.gmra.mxu2 %v1076_v14  ;;  %483 = vmatmul.bf16.gmra.mxu3 %v1080_v15 }
  0x4e   : > { %428 = vmatmul.bf16.gmra.mxu0 %v1069_v16  ;;  %448 = vmatmul.bf16.gmra.mxu1 %v1073_v17 }
  0x4f   : > { %468 = vmatmul.bf16.gmra.mxu2 %v1077_v18  ;;  %488 = vmatmul.bf16.gmra.mxu3 %v1081_v19 }
  0x5e   : > { %433 = vmatmul.bf16.gmra.mxu0 %v1070_v20  ;;  %453 = vmatmul.bf16.gmra.mxu1 %v1074_v21 }
  0x5f   : > { %473 = vmatmul.bf16.gmra.mxu2 %v1078_v22  ;;  %493 = vmatmul.bf16.gmra.mxu3 %v1082_v23 }
  0xab   : > { %v1408_v24 = vpop.f32.mrf.mxu0  ;;  %v1410_v25 = vpop.f32.mrf.mxu1 }
  0xb2   : > { %v1412_v26 = vpop.f32.mrf.mxu2  ;;  %v1414_v27 = vpop.f32.mrf.mxu3 }
  0xb3   : > { %v1416_v28 = vpop.f32.mrf.mxu0  ;;  %v1418_v29 = vpop.f32.mrf.mxu1 }
  0xba   : > { %v1420_v30 = vpop.f32.mrf.mxu2  ;;  %v1422_v31 = vpop.f32.mrf.mxu3 }
  0xbb   : > { %v1424_v32 = vpop.f32.mrf.mxu0  ;;  %v1426_v33 = vpop.f32.mrf.mxu1 }
  0xc2   : > { %v1428_v34 = vpop.f32.mrf.mxu2  ;;  %v1430_v35 = vpop.f32.mrf.mxu3 }
  0xc3   : > { %v1432_v36 = vpop.f32.mrf.mxu0  ;;  %v1434_v37 = vpop.f32.mrf.mxu1 }
  0xca   : > { %v1436_v38 = vpop.f32.mrf.mxu2  ;;  %v1438_v39 = vpop.f32.mrf.mxu3 }
  0xcb   : > { %v1440_v40 = vpop.f32.mrf.mxu0  ;;  %v1442_v41 = vpop.f32.mrf.mxu1 }
  0xd2   : > { %v1444_v42 = vpop.f32.mrf.mxu2  ;;  %v1446_v43 = vpop.f32.mrf.mxu3 }
  0xd3   : > { %v1448_v44 = vpop.f32.mrf.mxu0  ;;  %v1450_v45 = vpop.f32.mrf.mxu1 }
  0xda   : > { %v1452_v46 = vpop.f32.mrf.mxu2  ;;  %v1454_v47 = vpop.f32.mrf.mxu3 }
  0xdb   : > { %v1456_v48 = vpop.f32.mrf.mxu0  ;;  %v1458_v49 = vpop.f32.mrf.mxu1 }
  0xe2   : > { %v1460_v50 = vpop.f32.mrf.mxu2  ;;  %v1462_v51 = vpop.f32.mrf.mxu3 }
  0xe3   : > { %v1464_v52 = vpop.f32.mrf.mxu0  ;;  %v1466_v53 = vpop.f32.mrf.mxu1 }
  0xe6   : > { %502 = sbr.rel (%p1061_p7) target bundleno = 322 (0x142), region = 40 }
  0xea   : > { %v1468_v54 = vpop.f32.mrf.mxu2  ;;  %v1470_v55 = vpop.f32.mrf.mxu3 }
  0xeb   : > { %506 = sbr.rel (%p1062_p8) target bundleno = 243 (0xf3), region = 44 }
  0xf0   : > { %v1295_v56 = vmov 0.0  }
  0xf1   : > { %507 = vst [vmem:[#allocation2] sm:$0x1] %v1295_v56 }
  0xf2   : > { %508 = vst [vmem:[#allocation3] sm:$0x1] %v1295_v56 }
  0xf3 PF: > { %v510_v57 = vadd.f32 %v1416_v28, %v1408_v24  ;;  %v550_v58 = vmul.f32 %v1408_v24, %v1408_v24  ;;  %v551_v59 = vmul.f32 %v1416_v28, %v1416_v28  ;;  %v552_v61 = vmul.f32 %v1424_v32, %v1424_v32 }
  0xf4   : > { %v553_v63 = vmul.f32 %v1432_v36, %v1432_v36  ;;  %v554_v2 = vmul.f32 %v1440_v40, %v1440_v40  ;;  %v555_v5 = vmul.f32 %v1448_v44, %v1448_v44  ;;  %v556_v8 = vmul.f32 %v1456_v48, %v1456_v48 }
  0xf5   : > { %v511_v60 = vadd.f32 %v510_v57, %v1424_v32  ;;  %v582_v0 = vadd.f32 %v551_v59, %v550_v58  ;;  %v557_v11 = vmul.f32 %v1464_v52, %v1464_v52  ;;  %v558_v14 = vmul.f32 %v1410_v25, %v1410_v25 }
  0xf6   : > { %v559_v17 = vmul.f32 %v1418_v29, %v1418_v29  ;;  %v560_v20 = vmul.f32 %v1426_v33, %v1426_v33  ;;  %v561_v23 = vmul.f32 %v1434_v37, %v1434_v37  ;;  %v562_v58 = vmul.f32 %v1442_v41, %v1442_v41 }
  0xf7   : > { %v512_v62 = vadd.f32 %v511_v60, %v1432_v36  ;;  %v583_v3 = vadd.f32 %v582_v0, %v552_v61  ;;  %v563_v61 = vmul.f32 %v1450_v45, %v1450_v45  ;;  %v564_v0 = vmul.f32 %v1458_v49, %v1458_v49 }
  0xf9   : > { %v513_v1 = vadd.f32 %v512_v62, %v1440_v40  ;;  %v584_v6 = vadd.f32 %v583_v3, %v553_v63  ;;  %v565_v3 = vmul.f32 %v1466_v53, %v1466_v53 }
  0xfb   : > { %v514_v4 = vadd.f32 %v513_v1, %v1448_v44  ;;  %v585_v9 = vadd.f32 %v584_v6, %v554_v2  ;;  %v566_v6 = vmul.f32 %v1412_v26, %v1412_v26 }
  0xfd   : > { %v515_v7 = vadd.f32 %v514_v4, %v1456_v48  ;;  %v586_v12 = vadd.f32 %v585_v9, %v555_v5  ;;  %v567_v9 = vmul.f32 %v1420_v30, %v1420_v30 }
  0xff   : > { %v516_v10 = vadd.f32 %v515_v7, %v1464_v52  ;;  %v587_v15 = vadd.f32 %v586_v12, %v556_v8  ;;  %v568_v12 = vmul.f32 %v1428_v34, %v1428_v34 }
 0x101   : > { %v517_v13 = vadd.f32 %v516_v10, %v1410_v25  ;;  %v588_v18 = vadd.f32 %v587_v15, %v557_v11  ;;  %v569_v15 = vmul.f32 %v1436_v38, %v1436_v38 }
 0x103   : > { %v518_v16 = vadd.f32 %v517_v13, %v1418_v29  ;;  %v589_v21 = vadd.f32 %v588_v18, %v558_v14  ;;  %v570_v18 = vmul.f32 %v1444_v42, %v1444_v42 }
 0x105   : > { %v519_v19 = vadd.f32 %v518_v16, %v1426_v33  ;;  %v590_v56 = vadd.f32 %v589_v21, %v559_v17  ;;  %v571_v21 = vmul.f32 %v1452_v46, %v1452_v46 }
 0x107   : > { %v520_v22 = vadd.f32 %v519_v19, %v1434_v37  ;;  %v591_v59 = vadd.f32 %v590_v56, %v560_v20  ;;  %v572_v56 = vmul.f32 %v1460_v50, %v1460_v50 }
 0x109   : > { %v521_v57 = vadd.f32 %v520_v22, %v1442_v41  ;;  %v592_v62 = vadd.f32 %v591_v59, %v561_v23  ;;  %v573_v59 = vmul.f32 %v1468_v54, %v1468_v54 }
 0x10b   : > { %v522_v60 = vadd.f32 %v521_v57, %v1450_v45  ;;  %v593_v1 = vadd.f32 %v592_v62, %v562_v58  ;;  %v574_v62 = vmul.f32 %v1414_v27, %v1414_v27 }
 0x10d   : > { %v523_v63 = vadd.f32 %v522_v60, %v1458_v49  ;;  %v594_v4 = vadd.f32 %v593_v1, %v563_v61  ;;  %v575_v1 = vmul.f32 %v1422_v31, %v1422_v31 }
 0x10f   : > { %v524_v2 = vadd.f32 %v523_v63, %v1466_v53  ;;  %v595_v7 = vadd.f32 %v594_v4, %v564_v0  ;;  %v576_v4 = vmul.f32 %v1430_v35, %v1430_v35 }
 0x111   : > { %v525_v5 = vadd.f32 %v524_v2, %v1412_v26  ;;  %v596_v10 = vadd.f32 %v595_v7, %v565_v3  ;;  %v577_v7 = vmul.f32 %v1438_v39, %v1438_v39 }
 0x113   : > { %v526_v8 = vadd.f32 %v525_v5, %v1420_v30  ;;  %v597_v13 = vadd.f32 %v596_v10, %v566_v6  ;;  %v578_v10 = vmul.f32 %v1446_v43, %v1446_v43 }
 0x115   : > { %v527_v11 = vadd.f32 %v526_v8, %v1428_v34  ;;  %v598_v16 = vadd.f32 %v597_v13, %v567_v9  ;;  %v579_v13 = vmul.f32 %v1454_v47, %v1454_v47 }
 0x117   : > { %v528_v14 = vadd.f32 %v527_v11, %v1436_v38  ;;  %v599_v19 = vadd.f32 %v598_v16, %v568_v12  ;;  %v580_v16 = vmul.f32 %v1462_v51, %v1462_v51 }
 0x119   : > { %v529_v17 = vadd.f32 %v528_v14, %v1444_v42  ;;  %v600_v22 = vadd.f32 %v599_v19, %v569_v15  ;;  %v581_v19 = vmul.f32 %v1470_v55, %v1470_v55 }
 0x11b   : > { %v530_v20 = vadd.f32 %v529_v17, %v1452_v46  ;;  %v601_v57 = vadd.f32 %v600_v22, %v570_v18 }
 0x11d   : > { %v531_v23 = vadd.f32 %v530_v20, %v1460_v50  ;;  %v602_v60 = vadd.f32 %v601_v57, %v571_v21 }
 0x11f   : > { %v532_v58 = vadd.f32 %v531_v23, %v1468_v54  ;;  %v603_v63 = vadd.f32 %v602_v60, %v572_v56 }
 0x121   : > { %v533_v61 = vadd.f32 %v532_v58, %v1414_v27  ;;  %v604_v2 = vadd.f32 %v603_v63, %v573_v59 }
 0x123   : > { %v534_v0 = vadd.f32 %v533_v61, %v1422_v31  ;;  %v605_v5 = vadd.f32 %v604_v2, %v574_v62  ;;  %v509_v62 = vld [vmem:[#allocation2] sm:$0x1] }
 0x125   : > { %v535_v3 = vadd.f32 %v534_v0, %v1430_v35  ;;  %v606_v8 = vadd.f32 %v605_v5, %v575_v1 }
 0x127   : > { %v536_v6 = vadd.f32 %v535_v3, %v1438_v39  ;;  %v607_v11 = vadd.f32 %v606_v8, %v576_v4  ;;  %v549_v4 = vld [vmem:[#allocation3] sm:$0x1] }
 0x129   : > { %v537_v9 = vadd.f32 %v536_v6, %v1446_v43  ;;  %v608_v14 = vadd.f32 %v607_v11, %v577_v7 }
 0x12b   : > { %v538_v12 = vadd.f32 %v537_v9, %v1454_v47  ;;  %v609_v17 = vadd.f32 %v608_v14, %v578_v10 }
 0x12d   : > { %v539_v15 = vadd.f32 %v538_v12, %v1462_v51  ;;  %v610_v20 = vadd.f32 %v609_v17, %v579_v13 }
 0x12f   : > { %v540_v18 = vadd.f32 %v539_v15, %v1470_v55  ;;  %v611_v22 = vadd.f32 %v610_v20, %v580_v16 }
 0x131   : > { %v541_v21 = vrot.slane %v540_v18, 4  ;;  %v612_v56 = vadd.f32 %v611_v22, %v581_v19 }
 0x133   : > { %v542_v23 = vadd.f32 %v541_v21, %v540_v18  ;;  %v613_v58 = vrot.slane %v612_v56, 4 }
 0x135   : > { %v543_v57 = vrot.slane %v542_v23, 2  ;;  %v614_v60 = vadd.f32 %v613_v58, %v612_v56 }
 0x137   : > { %v544_v59 = vadd.f32 %v543_v57, %v542_v23  ;;  %v615_v63 = vrot.slane %v614_v60, 2 }
 0x139   : > { %v545_v61 = vrot.slane %v544_v59, 1  ;;  %v616_v1 = vadd.f32 %v615_v63, %v614_v60 }
 0x13b   : > { %v546_v0 = vadd.f32 %v545_v61, %v544_v59  ;;  %v617_v3 = vrot.slane %v616_v1, 1 }
 0x13d   : > { %v547_v2 = vadd.f32 %v546_v0, %v509_v62  ;;  %v618_v5 = vadd.f32 %v617_v3, %v616_v1 }
 0x13f   : > { %548 = vst [vmem:[#allocation2] sm:$0x1] %v547_v2  ;;  %v619_v6 = vadd.f32 %v618_v5, %v549_v4 }
 0x141   : > { %620 = vst [vmem:[#allocation3] sm:$0x1] %v619_v6 }
 0x142 PF: > { %p1063_p9 = scmp.ne.s32.totalorder %s1281_s16, 1 }
 0x143   : > { %p1064_p10 = scmp.ne.s32.totalorder (!%p1063_p9), %s1277_s15, 0 }
 0x144   : > { %624 = sbr.rel (%p1063_p9) target bundleno = 421 (0x1a5), region = 48 }
 0x149   : > { %628 = sbr.rel (%p1064_p10) target bundleno = 368 (0x170), region = 52 }
 0x14e   : > { %v629_v7 = vld [vmem:[#allocation2] sm:$0x1]  ;;  %v631_v8 = vld [vmem:[#allocation3] sm:$0x1] }
 0x14f   : > { %v630_v9 = vmul.f32 0.001953125, %v629_v7  ;;  %v632_v10 = vmul.f32 0.001953125, %v631_v8  ;;  %v635_v19 = vld [vmem:[%s1711_s2] sm:$0x1] }
 0x150   : > { %v649_v23 = vld [vmem:[%s1712_s3] sm:$0x1] }
 0x151   : > { %v633_v11 = vmul.f32 %v630_v9, %v630_v9 }
 0x153   : > { %v634_v12 = vsub.f32 %v632_v10, %v633_v11 }
 0x155   : > { %v636_v13 = vadd.f32 1e-05, %v634_v12 }
 0x157   : > { %1251 = vrsqrt.f32 %v636_v13  ;;  %vm643_vm0 = vweird.f32 %v636_v13 }
 0x15d   : > { %v1252_v14 = vpop.eup %1251 }
 0x15e   : > { %v638_v15 = vmul.f32 %v1252_v14, %v636_v13  ;;  %vm644_vm1 = vweird.f32 %v1252_v14 }
 0x15f   : > { %vm645_vm2 = vmor %vm643_vm0, %vm644_vm1 }
 0x160   : > { %v639_v16 = vmul.f32 %v1252_v14, %v638_v15 }
 0x162   : > { %v640_v17 = vmul.f32 0.5, %v639_v16 }
 0x164   : > { %v641_v18 = vsub.f32 1.5, %v640_v17 }
 0x166   : > { %v642_v20 = vmul.f32 %v1252_v14, %v641_v18 }
 0x168   : > { %v646_v21 = vsel %vm645_vm2, %v1252_v14, %v642_v20 }
 0x169   : > { %v647_v22 = vmul.f32 %v646_v21, %v635_v19 }
 0x16b   : > { %648 = vst [vmem:[#allocation4] sm:$0x1] %v647_v22  ;;  %v650_v56 = vmul.f32 %v647_v22, %v630_v9 }
 0x16d   : > { %v651_v57 = vsub.f32 %v649_v23, %v650_v56 }
 0x16f   : > { %652 = vst [vmem:[#allocation5] sm:$0x1] %v651_v57 }
 0x170 PF:  {}
 0x172   : > { %v1578_v58 = vld [vmem:[#allocation4] ss:$0 sm:$0xff] }
 0x173   : > { %v657_v60 = vmul.f32 %v1578_v58, %v1408_v24  ;;  %v658_v61 = vmul.f32 %v1578_v58, %v1416_v28  ;;  %v659_v62 = vmul.f32 %v1578_v58, %v1424_v32  ;;  %v660_v63 = vmul.f32 %v1578_v58, %v1432_v36 }
 0x174   : > { %v661_v0 = vmul.f32 %v1578_v58, %v1440_v40  ;;  %v662_v1 = vmul.f32 %v1578_v58, %v1448_v44  ;;  %v663_v2 = vmul.f32 %v1578_v58, %v1456_v48  ;;  %v664_v24 = vmul.f32 %v1578_v58, %v1464_v52 }
 0x175   : > { %v665_v19 = vmul.f32 %v1578_v58, %v1410_v25  ;;  %v666_v21 = vmul.f32 %v1578_v58, %v1418_v29  ;;  %v667_v22 = vmul.f32 %v1578_v58, %v1426_v33  ;;  %v668_v23 = vmul.f32 %v1578_v58, %v1434_v37 }
 0x176   : > { %v1580_v59 = vld [vmem:[#allocation5] ss:$0 sm:$0xff]  ;;  %v669_v33 = vmul.f32 %v1578_v58, %v1442_v41  ;;  %v670_v37 = vmul.f32 %v1578_v58, %v1450_v45  ;;  %v671_v41 = vmul.f32 %v1578_v58, %v1458_v49  ;;  %v672_v45 = vmul.f32 %v1578_v58, %v1466_v53 }
 0x177   : > { %v693_v28 = vadd.f32 %v1580_v59, %v657_v60  ;;  %v694_v3 = vadd.f32 %v1580_v59, %v658_v61  ;;  %v695_v32 = vadd.f32 %v1580_v59, %v659_v62  ;;  %v696_v36 = vadd.f32 %v1580_v59, %v660_v63 }
 0x178   : > { %v697_v4 = vadd.f32 %v1580_v59, %v661_v0  ;;  %v698_v40 = vadd.f32 %v1580_v59, %v662_v1  ;;  %v699_v44 = vadd.f32 %v1580_v59, %v663_v2  ;;  %v700_v5 = vadd.f32 %v1580_v59, %v664_v24 }
 0x179   : > { %vm725_vm3 = vcmp.gt.f32.partialorder %v693_v28, 0.0  ;;  %vm726_vm4 = vcmp.gt.f32.partialorder %v694_v3, 0.0  ;;  %v757_v48 = vmul.f32 0.2, %v693_v28  ;;  %v758_v52 = vmul.f32 0.2, %v694_v3 }
 0x17a   : > { %vm727_vm5 = vcmp.gt.f32.partialorder %v695_v32, 0.0  ;;  %vm728_vm6 = vcmp.gt.f32.partialorder %v696_v36, 0.0  ;;  %v759_v6 = vmul.f32 0.2, %v695_v32  ;;  %v760_v7 = vmul.f32 0.2, %v696_v36 }
 0x17b   : > { %v789_v8 = vsel %vm725_vm3, %v693_v28, %v757_v48  ;;  %v790_v9 = vsel %vm726_vm4, %v694_v3, %v758_v52  ;;  %vm729_vm7 = vcmp.gt.f32.partialorder %v697_v4, 0.0  ;;  %vm730_vm8 = vcmp.gt.f32.partialorder %v698_v40, 0.0 }
 0x17c   : > { %v1094_v10 = vpack.c.bf16 %v790_v9, %v789_v8  ;;  %v791_v11 = vsel %vm727_vm5, %v695_v32, %v759_v6  ;;  %v792_v12 = vsel %vm728_vm6, %v696_v36, %v760_v7  ;;  %v761_v13 = vmul.f32 0.2, %v697_v4 }
 0x17d   : > { %v1099_v14 = vpack.c.bf16 %v792_v12, %v791_v11  ;;  %v762_v15 = vmul.f32 0.2, %v698_v40  ;;  %vm731_vm9 = vcmp.gt.f32.partialorder %v699_v44, 0.0  ;;  %vm732_vm10 = vcmp.gt.f32.partialorder %v700_v5, 0.0 }
 0x17e   : > { %1095 = vst [vmem:[%s1369_s7] sm:$0xff] %v1094_v10   ;;  %v793_v16 = vsel %vm729_vm7, %v697_v4, %v761_v13  ;;  %v763_v17 = vmul.f32 0.2, %v699_v44  ;;  %v764_v18 = vmul.f32 0.2, %v700_v5  ;;  %v701_v61 = vadd.f32 %v1580_v59, %v665_v19 }
 0x17f   : > { %1171 = vst [vmem:[%s1369_s7 + $0x8] sm:$0xff] %v1099_v14   ;;  %v794_v20 = vsel %vm730_vm8, %v698_v40, %v762_v15  ;;  %v702_v25 = vadd.f32 %v1580_v59, %v666_v21  ;;  %v703_v63 = vadd.f32 %v1580_v59, %v667_v22  ;;  %v704_v0 = vadd.f32 %v1580_v59, %v668_v23 }
 0x180   : > { %v1104_v56 = vpack.c.bf16 %v794_v20, %v793_v16  ;;  %v795_v57 = vsel %vm731_vm9, %v699_v44, %v763_v17  ;;  %v796_v60 = vsel %vm732_vm10, %v700_v5, %v764_v18  ;;  %vm733_vm11 = vcmp.gt.f32.partialorder %v701_v61, 0.0 }
 0x181   : > { %v1109_v62 = vpack.c.bf16 %v796_v60, %v795_v57  ;;  %v765_v29 = vmul.f32 0.2, %v701_v61  ;;  %vm734_vm12 = vcmp.gt.f32.partialorder %v702_v25, 0.0  ;;  %v766_v1 = vmul.f32 0.2, %v702_v25 }
 0x182   : > { %1172 = vst [vmem:[%s1369_s7 + $0x10] sm:$0xff] %v1104_v56   ;;  %vm735_vm13 = vcmp.gt.f32.partialorder %v703_v63, 0.0  ;;  %vm736_vm14 = vcmp.gt.f32.partialorder %v704_v0, 0.0  ;;  %v767_v24 = vmul.f32 0.2, %v703_v63  ;;  %v705_v3 = vadd.f32 %v1580_v59, %v669_v33 }
 0x183   : > { %1173 = vst [vmem:[%s1369_s7 + $0x18] sm:$0xff] %v1109_v62   ;;  %v797_v2 = vsel %vm733_vm11, %v701_v61, %v765_v29  ;;  %v768_v28 = vmul.f32 0.2, %v704_v0  ;;  %v798_v32 = vsel %vm734_vm12, %v702_v25, %v766_v1  ;;  %v706_v36 = vadd.f32 %v1580_v59, %v670_v37 }
 0x184   : > { %v1114_v4 = vpack.c.bf16 %v798_v32, %v797_v2  ;;  %v799_v40 = vsel %vm735_vm13, %v703_v63, %v767_v24  ;;  %vm737_vm15 = vcmp.gt.f32.partialorder %v705_v3, 0.0  ;;  %v769_v48 = vmul.f32 0.2, %v705_v3 }
 0x185   : > { %v800_v44 = vsel %vm736_vm14, %v704_v0, %v768_v28  ;;  %vm738_vm0 = vcmp.gt.f32.partialorder %v706_v36, 0.0  ;;  %v770_v52 = vmul.f32 0.2, %v706_v36  ;;  %v707_v6 = vadd.f32 %v1580_v59, %v671_v41 }
 0x186   : > { %v1119_v5 = vpack.c.bf16 %v800_v44, %v799_v40  ;;  %1174 = vst [vmem:[%s1369_s7 + $0x20] sm:$0xff] %v1114_v4   ;;  %v708_v7 = vadd.f32 %v1580_v59, %v672_v45  ;;  %v673_v49 = vmul.f32 %v1578_v58, %v1412_v26  ;;  %v674_v53 = vmul.f32 %v1578_v58, %v1420_v30 }
 0x187   : > { %v801_v8 = vsel %vm737_vm15, %v705_v3, %v769_v48  ;;  %v802_v9 = vsel %vm738_vm0, %v706_v36, %v770_v52  ;;  %v675_v10 = vmul.f32 %v1578_v58, %v1428_v34  ;;  %v676_v11 = vmul.f32 %v1578_v58, %v1436_v38 }
 0x188   : > { %1175 = vst [vmem:[%s1369_s7 + $0x28] sm:$0xff] %v1119_v5   ;;  %v1124_v12 = vpack.c.bf16 %v802_v9, %v801_v8  ;;  %vm739_vm1 = vcmp.gt.f32.partialorder %v707_v6, 0.0  ;;  %vm740_vm2 = vcmp.gt.f32.partialorder %v708_v7, 0.0  ;;  %v771_v13 = vmul.f32 0.2, %v707_v6 }
 0x189   : > { %v772_v14 = vmul.f32 0.2, %v708_v7  ;;  %v709_v15 = vadd.f32 %v1580_v59, %v673_v49  ;;  %v710_v26 = vadd.f32 %v1580_v59, %v674_v53  ;;  %v711_v30 = vadd.f32 %v1580_v59, %v675_v10 }
 0x18a   : > { %1176 = vst [vmem:[%s1369_s7 + $0x30] sm:$0xff] %v1124_v12   ;;  %v803_v16 = vsel %vm739_vm1, %v707_v6, %v771_v13  ;;  %v712_v17 = vadd.f32 %v1580_v59, %v676_v11  ;;  %v677_v34 = vmul.f32 %v1578_v58, %v1444_v42  ;;  %v678_v38 = vmul.f32 %v1578_v58, %v1452_v46 }
 0x18b   : > { %v804_v18 = vsel %vm740_vm2, %v708_v7, %v772_v14  ;;  %vm741_vm3 = vcmp.gt.f32.partialorder %v709_v15, 0.0  ;;  %vm742_vm4 = vcmp.gt.f32.partialorder %v710_v26, 0.0  ;;  %v773_v19 = vmul.f32 0.2, %v709_v15 }
 0x18c   : > { %v1129_v20 = vpack.c.bf16 %v804_v18, %v803_v16  ;;  %v774_v21 = vmul.f32 0.2, %v710_v26  ;;  %vm743_vm5 = vcmp.gt.f32.partialorder %v711_v30, 0.0  ;;  %vm744_vm6 = vcmp.gt.f32.partialorder %v712_v17, 0.0 }
 0x18d   : > { %v805_v22 = vsel %vm741_vm3, %v709_v15, %v773_v19  ;;  %v775_v23 = vmul.f32 0.2, %v711_v30  ;;  %v776_v56 = vmul.f32 0.2, %v712_v17  ;;  %v713_v57 = vadd.f32 %v1580_v59, %v677_v34 }
 0x18e   : > { %1177 = vst [vmem:[%s1369_s7 + $0x38] sm:$0xff] %v1129_v20   ;;  %v806_v60 = vsel %vm742_vm4, %v710_v26, %v774_v21  ;;  %v714_v42 = vadd.f32 %v1580_v59, %v678_v38  ;;  %v679_v46 = vmul.f32 %v1578_v58, %v1460_v50  ;;  %v680_v61 = vmul.f32 %v1578_v58, %v1468_v54 }
 0x18f   : > { %v1134_v62 = vpack.c.bf16 %v806_v60, %v805_v22  ;;  %v807_v25 = vsel %vm743_vm5, %v711_v30, %v775_v23  ;;  %v808_v63 = vsel %vm744_vm6, %v712_v17, %v776_v56  ;;  %vm745_vm7 = vcmp.gt.f32.partialorder %v713_v57, 0.0 }
 0x190   : > { %v1139_v0 = vpack.c.bf16 %v808_v63, %v807_v25  ;;  %vm746_vm8 = vcmp.gt.f32.partialorder %v714_v42, 0.0  ;;  %v777_v29 = vmul.f32 0.2, %v713_v57  ;;  %v778_v33 = vmul.f32 0.2, %v714_v42 }
 0x191   : > { %1178 = vst [vmem:[%s1369_s7 + $0x40] sm:$0xff] %v1134_v62   ;;  %v715_v37 = vadd.f32 %v1580_v59, %v679_v46  ;;  %v716_v1 = vadd.f32 %v1580_v59, %v680_v61  ;;  %v681_v50 = vmul.f32 %v1578_v58, %v1414_v27  ;;  %v682_v54 = vmul.f32 %v1578_v58, %v1422_v31 }
 0x192   : > { %1179 = vst [vmem:[%s1369_s7 + $0x48] sm:$0xff] %v1139_v0   ;;  %v809_v2 = vsel %vm745_vm7, %v713_v57, %v777_v29  ;;  %v810_v24 = vsel %vm746_vm8, %v714_v42, %v778_v33  ;;  %v683_v28 = vmul.f32 %v1578_v58, %v1430_v35  ;;  %v684_v3 = vmul.f32 %v1578_v58, %v1438_v39 }
 0x193   : > { %v1144_v32 = vpack.c.bf16 %v810_v24, %v809_v2  ;;  %vm747_vm9 = vcmp.gt.f32.partialorder %v715_v37, 0.0  ;;  %vm748_vm10 = vcmp.gt.f32.partialorder %v716_v1, 0.0  ;;  %v779_v36 = vmul.f32 0.2, %v715_v37 }
 0x194   : > { %v780_v41 = vmul.f32 0.2, %v716_v1  ;;  %v717_v45 = vadd.f32 %v1580_v59, %v681_v50  ;;  %v718_v27 = vadd.f32 %v1580_v59, %v682_v54  ;;  %v719_v31 = vadd.f32 %v1580_v59, %v683_v28 }
 0x195   : > { %1180 = vst [vmem:[%s1369_s7 + $0x50] sm:$0xff] %v1144_v32   ;;  %v811_v4 = vsel %vm747_vm9, %v715_v37, %v779_v36  ;;  %v720_v40 = vadd.f32 %v1580_v59, %v684_v3  ;;  %v685_v35 = vmul.f32 %v1578_v58, %v1446_v43  ;;  %v686_v39 = vmul.f32 %v1578_v58, %v1454_v47 }
 0x196   : > { %v812_v44 = vsel %vm748_vm10, %v716_v1, %v780_v41  ;;  %vm749_vm11 = vcmp.gt.f32.partialorder %v717_v45, 0.0  ;;  %vm750_vm12 = vcmp.gt.f32.partialorder %v718_v27, 0.0  ;;  %v781_v5 = vmul.f32 0.2, %v717_v45 }
 0x197   : > { %v1149_v48 = vpack.c.bf16 %v812_v44, %v811_v4  ;;  %v782_v52 = vmul.f32 0.2, %v718_v27  ;;  %vm751_vm13 = vcmp.gt.f32.partialorder %v719_v31, 0.0  ;;  %vm752_vm14 = vcmp.gt.f32.partialorder %v720_v40, 0.0 }
 0x198   : > { %v813_v6 = vsel %vm749_vm11, %v717_v45, %v781_v5  ;;  %v783_v7 = vmul.f32 0.2, %v719_v31  ;;  %v784_v49 = vmul.f32 0.2, %v720_v40  ;;  %v721_v53 = vadd.f32 %v1580_v59, %v685_v35 }
 0x199   : > { %1181 = vst [vmem:[%s1369_s7 + $0x58] sm:$0xff] %v1149_v48   ;;  %v814_v43 = vsel %vm750_vm12, %v718_v27, %v782_v52  ;;  %v722_v8 = vadd.f32 %v1580_v59, %v686_v39  ;;  %v687_v47 = vmul.f32 %v1578_v58, %v1462_v51  ;;  %v688_v9 = vmul.f32 %v1578_v58, %v1470_v55 }
 0x19a   : > { %v1154_v10 = vpack.c.bf16 %v814_v43, %v813_v6  ;;  %v815_v11 = vsel %vm751_vm13, %v719_v31, %v783_v7  ;;  %v816_v12 = vsel %vm752_vm14, %v720_v40, %v784_v49  ;;  %vm753_vm15 = vcmp.gt.f32.partialorder %v721_v53, 0.0 }
 0x19b   : > { %v1159_v13 = vpack.c.bf16 %v816_v12, %v815_v11  ;;  %vm754_vm0 = vcmp.gt.f32.partialorder %v722_v8, 0.0  ;;  %v785_v14 = vmul.f32 0.2, %v721_v53  ;;  %v786_v15 = vmul.f32 0.2, %v722_v8 }
 0x19c   : > { %1182 = vst [vmem:[%s1369_s7 + $0x60] sm:$0xff] %v1154_v10   ;;  %v723_v26 = vadd.f32 %v1580_v59, %v687_v47  ;;  %v724_v30 = vadd.f32 %v1580_v59, %v688_v9 }
 0x19d   : > { %1183 = vst [vmem:[%s1369_s7 + $0x68] sm:$0xff] %v1159_v13   ;;  %v817_v51 = vsel %vm753_vm15, %v721_v53, %v785_v14  ;;  %v818_v16 = vsel %vm754_vm0, %v722_v8, %v786_v15 }
 0x19e   : > { %v1164_v17 = vpack.c.bf16 %v818_v16, %v817_v51  ;;  %vm755_vm1 = vcmp.gt.f32.partialorder %v723_v26, 0.0  ;;  %vm756_vm2 = vcmp.gt.f32.partialorder %v724_v30, 0.0  ;;  %v787_v55 = vmul.f32 0.2, %v723_v26 }
 0x19f   : > { %v788_v58 = vmul.f32 0.2, %v724_v30 }
 0x1a0   : > { %1184 = vst [vmem:[%s1369_s7 + $0x70] sm:$0xff] %v1164_v17   ;;  %v819_v34 = vsel %vm755_vm1, %v723_v26, %v787_v55 }
 0x1a1   : > { %v820_v38 = vsel %vm756_vm2, %v724_v30, %v788_v58 }
 0x1a2   : > { %v1169_v18 = vpack.c.bf16 %v820_v38, %v819_v34 }
 0x1a4   : > { %1185 = vst [vmem:[%s1369_s7 + $0x78] sm:$0xff] %v1169_v18  }
 0x1a5 PF: > { %s14_s19 = sadd.s32 1, %s1293_s19   ;;  %s1714_s15 = smov %s1285_s17 }
 0x1a6   : > { %p11_p11 = scmp.ge.s32.totalorder %s14_s19, 6   ;;  %s1715_s16 = smov %s1289_s18 }
 0x1a7   : > { %s1716_s17 = smov %s1719_s20  ;;  %s1717_s18 = smov %s1723_s21 }
 0x1a8   :  { %13 = sbr.rel (!%p11_p11) target bundleno = 3 (0x3), region = 82 }

// kernel: critic_forward.6
= control target key start
LH: loop header
LB: loop body
LE: loop exit
PB: predicated region body
PF: predicated region fallthrough
CT: control target
= control target key end

     0   :  { %s1153_s15 = smov 0   ;;  %s1155_s16 = smov 0   ;;  %s1478_s0 = inlined_call_operand.vmem [shape: bf16[128,256], index: 0, kind: input, shape index: {}]   ;;  %s1479_s1 = inlined_call_operand.vmem [shape: bf16[256,128], index: 1, kind: input, shape index: {}]   ;;  %s1480_s2 = inlined_call_operand.vmem [shape: f32[1,128], index: 2, kind: input, shape index: {}]   ;;  %s1481_s3 = inlined_call_operand.vmem [shape: f32[1,128], index: 3, kind: input, shape index: {}]   ;;  %s1482_s4 = inlined_call_operand.vmem [shape: bf16[128,128], index: 4, kind: output, shape index: {}]  }
   0x1   :  { %s1157_s17 = smov 0  }
   0x2 LB: > { %s26_s18 = sadd.s32 1, %s1121_s16  ;;  %p844_p0 = scmp.ge.s32.totalorder %s1125_s17, 1  ;;  %s1125_s17 = sphi %s1157_s17, %s14_s17   ;;  %s1121_s16 = sphi %s1155_s16, %s1484_s16   ;;  %s1117_s15 = sphi %s1153_s15, %s1483_s15  }
   0x3   : > { %p28_p1 = scmp.ge.s32.totalorder %s26_s18, 2  ;;  %p178_p2 = scmp.lt.s32.totalorder %s1125_s17, 3 }
   0x5   : > { %s1486_s18 = smov (%p28_p1, %s26_s18), 0  ;;  %p179_p3 = pnand %p844_p0, %p178_p2 }
   0x6   : > { %p973_p4 = scmp.ne.s32.totalorder (!%p179_p3), %s1117_s15, 0 }
   0x7   : > { %182 = sbr.rel (%p179_p3) target bundleno = 352 (0x160), region = 36 }
   0xc   : > { %v1002_v0 = vld [vmem:[%s1479_s1 + $0x38] sm:$0xff]  ;;  %v1001_v2 = vld [vmem:[%s1479_s1 + $0x30] sm:$0xff]  ;;  %v1000_v4 = vld [vmem:[%s1479_s1 + $0x28] sm:$0xff] }
   0xd   : > { %v1010_v1 = vld [vmem:[%s1479_s1 + $0x78] sm:$0xff]  ;;  %445 = vmatpush.bf16.msra.mxu0 %v1002_v0  ;;  %1058 = vmatpush.bf16.msra.mxu2 %v1002_v0  ;;  %v1009_v3 = vld [vmem:[%s1479_s1 + $0x70] sm:$0xff]  ;;  %v1008_v5 = vld [vmem:[%s1479_s1 + $0x68] sm:$0xff] }
   0xe   : > { %494 = vmatpush.bf16.msra.mxu1 %v1010_v1  ;;  %1066 = vmatpush.bf16.msra.mxu3 %v1010_v1  ;;  %v999_v6 = vld [vmem:[%s1479_s1 + $0x20] sm:$0xff]  ;;  %v998_v8 = vld [vmem:[%s1479_s1 + $0x18] sm:$0xff]  ;;  %v997_v10 = vld [vmem:[%s1479_s1 + $0x10] sm:$0xff] }
   0xf   : > { %v1007_v7 = vld [vmem:[%s1479_s1 + $0x60] sm:$0xff]  ;;  %v1006_v9 = vld [vmem:[%s1479_s1 + $0x58] sm:$0xff]  ;;  %v1005_v11 = vld [vmem:[%s1479_s1 + $0x50] sm:$0xff] }
  0x10   : > { %v996_v12 = vld [vmem:[%s1479_s1 + $0x8] sm:$0xff]  ;;  %v995_v14 = vld [vmem:[%s1479_s1] sm:$0xff]  ;;  %v855_v28 = vld [vmem:[%s1478_s0 + $0x10] sm:$0xf] }
  0x11   : > { %446 = vmatpush.bf16.msra.mxu0 %v1001_v2  ;;  %1059 = vmatpush.bf16.msra.mxu2 %v1001_v2  ;;  %v1004_v13 = vld [vmem:[%s1479_s1 + $0x48] sm:$0xff]  ;;  %v1003_v15 = vld [vmem:[%s1479_s1 + $0x40] sm:$0xff]  ;;  %v982_v29 = vld [vmem:[%s1478_s0 + $0x14] sm:$0xf0] }
  0x12   : > { %495 = vmatpush.bf16.msra.mxu1 %v1009_v3  ;;  %1067 = vmatpush.bf16.msra.mxu3 %v1009_v3  ;;  %v847_v16 = vld [vmem:[%s1478_s0] sm:$0xf]  ;;  %v980_v17 = vld [vmem:[%s1478_s0 + $0x4] sm:$0xf0]  ;;  %v979_v20 = vld [vmem:[%s1478_s0 + $0x4] sm:$0xf]  ;;  %v856_v36 = vor.u32 %v982_v29, %v855_v28 }
  0x13   : > { %v879_v18 = vld [vmem:[%s1478_s0 + $0x40] sm:$0xf]  ;;  %v988_v19 = vld [vmem:[%s1478_s0 + $0x44] sm:$0xf0]  ;;  %v849_v21 = vld [vmem:[%s1478_s0 + $0x8] sm:$0xf0]  ;;  %v848_v24 = vor.u32 %v980_v17, %v847_v16 }
  0x14   : > { %v987_v22 = vld [vmem:[%s1478_s0 + $0x44] sm:$0xf]  ;;  %v881_v23 = vld [vmem:[%s1478_s0 + $0x48] sm:$0xf0]  ;;  %v880_v25 = vor.u32 %v988_v19, %v879_v18  ;;  %v852_v26 = vor.u32 %v979_v20, %v849_v21  ;;  %v887_v30 = vld [vmem:[%s1478_s0 + $0x50] sm:$0xf] }
  0x15   : > { %447 = vmatpush.bf16.msra.mxu0 %v1000_v4  ;;  %1060 = vmatpush.bf16.msra.mxu2 %v1000_v4  ;;  %v884_v27 = vor.u32 %v987_v22, %v881_v23  ;;  %v990_v31 = vld [vmem:[%s1478_s0 + $0x54] sm:$0xf0]  ;;  %v981_v32 = vld [vmem:[%s1478_s0 + $0x14] sm:$0xf]  ;;  %v857_v33 = vld [vmem:[%s1478_s0 + $0x18] sm:$0xf0] }
  0x16   : > { %496 = vmatpush.bf16.msra.mxu1 %v1008_v5  ;;  %1068 = vmatpush.bf16.msra.mxu3 %v1008_v5  ;;  %v989_v34 = vld [vmem:[%s1478_s0 + $0x54] sm:$0xf]  ;;  %v889_v35 = vld [vmem:[%s1478_s0 + $0x58] sm:$0xf0]  ;;  %v888_v37 = vor.u32 %v990_v31, %v887_v30  ;;  %v860_v38 = vor.u32 %v981_v32, %v857_v33  ;;  %v863_v40 = vld [vmem:[%s1478_s0 + $0x20] sm:$0xf] }
  0x17   : > { %v892_v39 = vor.u32 %v989_v34, %v889_v35  ;;  %v984_v41 = vld [vmem:[%s1478_s0 + $0x24] sm:$0xf0]  ;;  %v895_v42 = vld [vmem:[%s1478_s0 + $0x60] sm:$0xf]  ;;  %v983_v44 = vld [vmem:[%s1478_s0 + $0x24] sm:$0xf] }
  0x18   : > { %v992_v43 = vld [vmem:[%s1478_s0 + $0x64] sm:$0xf0]  ;;  %v865_v45 = vld [vmem:[%s1478_s0 + $0x28] sm:$0xf0]  ;;  %v991_v46 = vld [vmem:[%s1478_s0 + $0x64] sm:$0xf]  ;;  %v864_v48 = vor.u32 %v984_v41, %v863_v40 }
  0x19   : > { %448 = vmatpush.bf16.msra.mxu0 %v999_v6  ;;  %1061 = vmatpush.bf16.msra.mxu2 %v999_v6  ;;  %v897_v47 = vld [vmem:[%s1478_s0 + $0x68] sm:$0xf0]  ;;  %v896_v49 = vor.u32 %v992_v43, %v895_v42  ;;  %v868_v50 = vor.u32 %v983_v44, %v865_v45  ;;  %v871_v52 = vld [vmem:[%s1478_s0 + $0x30] sm:$0xf]  ;;  %v986_v53 = vld [vmem:[%s1478_s0 + $0x34] sm:$0xf0] }
  0x1a   : > { %497 = vmatpush.bf16.msra.mxu1 %v1007_v7  ;;  %1069 = vmatpush.bf16.msra.mxu3 %v1007_v7  ;;  %v900_v51 = vor.u32 %v991_v46, %v897_v47  ;;  %v903_v54 = vld [vmem:[%s1478_s0 + $0x70] sm:$0xf]  ;;  %v994_v55 = vld [vmem:[%s1478_s0 + $0x74] sm:$0xf0]  ;;  %v985_v56 = vld [vmem:[%s1478_s0 + $0x34] sm:$0xf]  ;;  %v872_v60 = vor.u32 %v986_v53, %v871_v52 }
  0x1b   : > { %v873_v57 = vld [vmem:[%s1478_s0 + $0x38] sm:$0xf0]  ;;  %v993_v58 = vld [vmem:[%s1478_s0 + $0x74] sm:$0xf]  ;;  %v904_v61 = vor.u32 %v994_v55, %v903_v54 }
  0x1c   : > { %v905_v59 = vld [vmem:[%s1478_s0 + $0x78] sm:$0xf0]  ;;  %v876_v62 = vor.u32 %v985_v56, %v873_v57 }
  0x1d   : > { %449 = vmatpush.bf16.msra.mxu0 %v998_v8  ;;  %1062 = vmatpush.bf16.msra.mxu2 %v998_v8  ;;  %v908_v63 = vor.u32 %v993_v58, %v905_v59 }
  0x1e   : > { %498 = vmatpush.bf16.msra.mxu1 %v1006_v9  ;;  %1070 = vmatpush.bf16.msra.mxu3 %v1006_v9 }
  0x21   : > { %450 = vmatpush.bf16.msra.mxu0 %v997_v10  ;;  %1063 = vmatpush.bf16.msra.mxu2 %v997_v10 }
  0x22   : > { %499 = vmatpush.bf16.msra.mxu1 %v1005_v11  ;;  %1071 = vmatpush.bf16.msra.mxu3 %v1005_v11 }
  0x25   : > { %451 = vmatpush.bf16.msra.mxu0 %v996_v12  ;;  %1064 = vmatpush.bf16.msra.mxu2 %v996_v12 }
  0x26   : > { %500 = vmatpush.bf16.msra.mxu1 %v1004_v13  ;;  %1072 = vmatpush.bf16.msra.mxu3 %v1004_v13 }
  0x29   : > { %452 = vmatpush.bf16.msra.mxu0 %v995_v14  ;;  %1065 = vmatpush.bf16.msra.mxu2 %v995_v14 }
  0x2a   : > { %501 = vmatpush.bf16.msra.mxu1 %v1003_v15  ;;  %1073 = vmatpush.bf16.msra.mxu3 %v1003_v15 }
  0x2c   : > { %453 = vmatmul.bf16.vlgmr.msra.gmra.mxu0 %v848_v24  ;;  %473 = vmatmul.bf16.vlgmr.msra.gmra.mxu2 %v880_v25 }
  0x2d   : > { %502 = vmatmul.bf16.vlgmr.msra.gmra.mxu1 %v852_v26  ;;  %522 = vmatmul.bf16.vlgmr.msra.gmra.mxu3 %v884_v27 }
  0x3c   : > { %458 = vmatmul.bf16.gmra.mxu0 %v856_v36  ;;  %478 = vmatmul.bf16.gmra.mxu2 %v888_v37 }
  0x3d   : > { %507 = vmatmul.bf16.gmra.mxu1 %v860_v38  ;;  %527 = vmatmul.bf16.gmra.mxu3 %v892_v39 }
  0x4c   : > { %463 = vmatmul.bf16.gmra.mxu0 %v864_v48  ;;  %483 = vmatmul.bf16.gmra.mxu2 %v896_v49 }
  0x4d   : > { %512 = vmatmul.bf16.gmra.mxu1 %v868_v50  ;;  %532 = vmatmul.bf16.gmra.mxu3 %v900_v51 }
  0x5c   : > { %468 = vmatmul.bf16.gmra.mxu0 %v872_v60  ;;  %488 = vmatmul.bf16.gmra.mxu2 %v904_v61 }
  0x5d   : > { %517 = vmatmul.bf16.gmra.mxu1 %v876_v62  ;;  %537 = vmatmul.bf16.gmra.mxu3 %v908_v63 }
  0xa9   : > { %v454_v0 = vpop.f32.mrf.mxu0 }
  0xaa   : > { %v503_v1 = vpop.f32.mrf.mxu1 }
  0xab   : > { %v1317_v2 = vadd.f32 %v503_v1, %v454_v0 }
  0xaf   : > { %v474_v3 = vpop.f32.mrf.mxu2 }
  0xb0   : > { %v523_v4 = vpop.f32.mrf.mxu3 }
  0xb1   : > { %v1319_v5 = vadd.f32 %v523_v4, %v474_v3  ;;  %v456_v6 = vpop.f32.mrf.mxu0 }
  0xb2   : > { %v505_v7 = vpop.f32.mrf.mxu1 }
  0xb3   : > { %v1321_v8 = vadd.f32 %v505_v7, %v456_v6 }
  0xb7   : > { %v476_v9 = vpop.f32.mrf.mxu2 }
  0xb8   : > { %v525_v10 = vpop.f32.mrf.mxu3 }
  0xb9   : > { %v1323_v11 = vadd.f32 %v525_v10, %v476_v9  ;;  %v459_v12 = vpop.f32.mrf.mxu0 }
  0xba   : > { %v508_v13 = vpop.f32.mrf.mxu1 }
  0xbb   : > { %v1325_v14 = vadd.f32 %v508_v13, %v459_v12 }
  0xbf   : > { %v479_v15 = vpop.f32.mrf.mxu2 }
  0xc0   : > { %v528_v16 = vpop.f32.mrf.mxu3 }
  0xc1   : > { %v1327_v17 = vadd.f32 %v528_v16, %v479_v15  ;;  %v461_v18 = vpop.f32.mrf.mxu0 }
  0xc2   : > { %v510_v19 = vpop.f32.mrf.mxu1 }
  0xc3   : > { %v1329_v20 = vadd.f32 %v510_v19, %v461_v18 }
  0xc7   : > { %v481_v21 = vpop.f32.mrf.mxu2 }
  0xc8   : > { %v530_v22 = vpop.f32.mrf.mxu3 }
  0xc9   : > { %v1331_v23 = vadd.f32 %v530_v22, %v481_v21  ;;  %v464_v24 = vpop.f32.mrf.mxu0 }
  0xca   : > { %v513_v25 = vpop.f32.mrf.mxu1 }
  0xcb   : > { %v1333_v26 = vadd.f32 %v513_v25, %v464_v24 }
  0xcf   : > { %v484_v27 = vpop.f32.mrf.mxu2 }
  0xd0   : > { %v533_v28 = vpop.f32.mrf.mxu3 }
  0xd1   : > { %v1335_v29 = vadd.f32 %v533_v28, %v484_v27  ;;  %v466_v30 = vpop.f32.mrf.mxu0 }
  0xd2   : > { %v515_v31 = vpop.f32.mrf.mxu1 }
  0xd3   : > { %v1337_v32 = vadd.f32 %v515_v31, %v466_v30 }
  0xd7   : > { %v486_v33 = vpop.f32.mrf.mxu2 }
  0xd8   : > { %v535_v34 = vpop.f32.mrf.mxu3 }
  0xd9   : > { %v1339_v35 = vadd.f32 %v535_v34, %v486_v33  ;;  %v469_v36 = vpop.f32.mrf.mxu0 }
  0xda   : > { %v518_v37 = vpop.f32.mrf.mxu1 }
  0xdb   : > { %v1341_v38 = vadd.f32 %v518_v37, %v469_v36 }
  0xdf   : > { %v489_v39 = vpop.f32.mrf.mxu2 }
  0xe0   : > { %v538_v40 = vpop.f32.mrf.mxu3 }
  0xe1   : > { %v1343_v41 = vadd.f32 %v538_v40, %v489_v39  ;;  %v471_v42 = vpop.f32.mrf.mxu0 }
  0xe2   : > { %v520_v43 = vpop.f32.mrf.mxu1 }
  0xe3   : > { %v1345_v44 = vadd.f32 %v520_v43, %v471_v42 }
  0xe5   : > { %546 = sbr.rel (%p973_p4) target bundleno = 281 (0x119), region = 40 }
  0xe7   : > { %v491_v45 = vpop.f32.mrf.mxu2 }
  0xe8   : > { %v540_v46 = vpop.f32.mrf.mxu3 }
  0xe9   : > { %v1347_v47 = vadd.f32 %v540_v46, %v491_v45 }
  0xea   : > { %v554_v48 = vadd.f32 %v1321_v8, %v1317_v2  ;;  %v1127_v49 = vmov 0.0   ;;  %v578_v50 = vmul.f32 %v1317_v2, %v1317_v2  ;;  %v579_v51 = vmul.f32 %v1321_v8, %v1321_v8 }
  0xeb   : > { %551 = vst [vmem:[#allocation2] sm:$0x1] %v1127_v49  ;;  %v580_v53 = vmul.f32 %v1325_v14, %v1325_v14  ;;  %v581_v55 = vmul.f32 %v1329_v20, %v1329_v20  ;;  %v582_v58 = vmul.f32 %v1333_v26, %v1333_v26  ;;  %v583_v61 = vmul.f32 %v1337_v32, %v1337_v32 }
  0xec   : > { %552 = vst [vmem:[#allocation3] sm:$0x1] %v1127_v49  ;;  %v555_v52 = vadd.f32 %v554_v48, %v1325_v14  ;;  %v594_v56 = vadd.f32 %v579_v51, %v578_v50  ;;  %v584_v0 = vmul.f32 %v1341_v38, %v1341_v38  ;;  %v585_v4 = vmul.f32 %v1345_v44, %v1345_v44 }
  0xed   : > { %v586_v9 = vmul.f32 %v1319_v5, %v1319_v5  ;;  %v587_v13 = vmul.f32 %v1323_v11, %v1323_v11  ;;  %v588_v18 = vmul.f32 %v1327_v17, %v1327_v17  ;;  %v589_v22 = vmul.f32 %v1331_v23, %v1331_v23 }
  0xee   : > { %v556_v54 = vadd.f32 %v555_v52, %v1329_v20  ;;  %v595_v59 = vadd.f32 %v594_v56, %v580_v53  ;;  %v590_v27 = vmul.f32 %v1335_v29, %v1335_v29  ;;  %v591_v31 = vmul.f32 %v1339_v35, %v1339_v35 }
  0xef   : > { %v592_v36 = vmul.f32 %v1343_v41, %v1343_v41  ;;  %v593_v40 = vmul.f32 %v1347_v47, %v1347_v47 }
  0xf0   : > { %v557_v57 = vadd.f32 %v556_v54, %v1333_v26  ;;  %v596_v62 = vadd.f32 %v595_v59, %v581_v55 }
  0xf2   : > { %v558_v60 = vadd.f32 %v557_v57, %v1337_v32  ;;  %v597_v1 = vadd.f32 %v596_v62, %v582_v58  ;;  %v553_v54 = vld [vmem:[#allocation2] sm:$0x1] }
  0xf4   : > { %v559_v63 = vadd.f32 %v558_v60, %v1341_v38  ;;  %v598_v6 = vadd.f32 %v597_v1, %v583_v61  ;;  %v577_v60 = vld [vmem:[#allocation3] sm:$0x1] }
  0xf6   : > { %v560_v3 = vadd.f32 %v559_v63, %v1345_v44  ;;  %v599_v10 = vadd.f32 %v598_v6, %v584_v0 }
  0xf8   : > { %v561_v7 = vadd.f32 %v560_v3, %v1319_v5  ;;  %v600_v15 = vadd.f32 %v599_v10, %v585_v4 }
  0xfa   : > { %v562_v12 = vadd.f32 %v561_v7, %v1323_v11  ;;  %v601_v19 = vadd.f32 %v600_v15, %v586_v9 }
  0xfc   : > { %v563_v16 = vadd.f32 %v562_v12, %v1327_v17  ;;  %v602_v24 = vadd.f32 %v601_v19, %v587_v13 }
  0xfe   : > { %v564_v21 = vadd.f32 %v563_v16, %v1331_v23  ;;  %v603_v28 = vadd.f32 %v602_v24, %v588_v18 }
 0x100   : > { %v565_v25 = vadd.f32 %v564_v21, %v1335_v29  ;;  %v604_v33 = vadd.f32 %v603_v28, %v589_v22 }
 0x102   : > { %v566_v30 = vadd.f32 %v565_v25, %v1339_v35  ;;  %v605_v37 = vadd.f32 %v604_v33, %v590_v27 }
 0x104   : > { %v567_v34 = vadd.f32 %v566_v30, %v1343_v41  ;;  %v606_v42 = vadd.f32 %v605_v37, %v591_v31 }
 0x106   : > { %v568_v39 = vadd.f32 %v567_v34, %v1347_v47  ;;  %v607_v45 = vadd.f32 %v606_v42, %v592_v36 }
 0x108   : > { %v569_v43 = vrot.slane %v568_v39, 4  ;;  %v608_v48 = vadd.f32 %v607_v45, %v593_v40 }
 0x10a   : > { %v570_v46 = vadd.f32 %v569_v43, %v568_v39  ;;  %v609_v50 = vrot.slane %v608_v48, 4 }
 0x10c   : > { %v571_v49 = vrot.slane %v570_v46, 2  ;;  %v610_v52 = vadd.f32 %v609_v50, %v608_v48 }
 0x10e   : > { %v572_v51 = vadd.f32 %v571_v49, %v570_v46  ;;  %v611_v55 = vrot.slane %v610_v52, 2 }
 0x110   : > { %v573_v53 = vrot.slane %v572_v51, 1  ;;  %v612_v57 = vadd.f32 %v611_v55, %v610_v52 }
 0x112   : > { %v574_v56 = vadd.f32 %v573_v53, %v572_v51  ;;  %v613_v59 = vrot.slane %v612_v57, 1 }
 0x114   : > { %v575_v58 = vadd.f32 %v574_v56, %v553_v54  ;;  %v614_v61 = vadd.f32 %v613_v59, %v612_v57 }
 0x116   : > { %576 = vst [vmem:[#allocation2] sm:$0x1] %v575_v58  ;;  %v615_v62 = vadd.f32 %v614_v61, %v577_v60 }
 0x118   : > { %616 = vst [vmem:[#allocation3] sm:$0x1] %v615_v62 }
 0x119 PF: > { %p974_p5 = scmp.ne.s32.totalorder %s1117_s15, 1 }
 0x11b   : > { %620 = sbr.rel (%p974_p5) target bundleno = 352 (0x160), region = 48 }
 0x120   : > { %v625_v63 = vld [vmem:[#allocation2] sm:$0x1]  ;;  %v627_v0 = vld [vmem:[#allocation3] sm:$0x1] }
 0x121   : > { %v626_v1 = vmul.f32 0.0078125, %v625_v63  ;;  %v628_v3 = vmul.f32 0.0078125, %v627_v0  ;;  %v631_v16 = vld [vmem:[%s1480_s2] sm:$0x1] }
 0x122   : > { %v645_v22 = vld [vmem:[%s1481_s3] sm:$0x1] }
 0x123   : > { %v629_v4 = vmul.f32 %v626_v1, %v626_v1 }
 0x125   : > { %v630_v6 = vsub.f32 %v628_v3, %v629_v4 }
 0x127   : > { %v632_v7 = vadd.f32 1e-05, %v630_v6 }
 0x129   : > { %1101 = vrsqrt.f32 %v632_v7  ;;  %vm639_vm0 = vweird.f32 %v632_v7 }
 0x12f   : > { %v1102_v9 = vpop.eup %1101 }
 0x130   : > { %v634_v10 = vmul.f32 %v1102_v9, %v632_v7  ;;  %vm640_vm1 = vweird.f32 %v1102_v9 }
 0x131   : > { %vm641_vm2 = vmor %vm639_vm0, %vm640_vm1 }
 0x132   : > { %v635_v12 = vmul.f32 %v1102_v9, %v634_v10 }
 0x134   : > { %v636_v13 = vmul.f32 0.5, %v635_v12 }
 0x136   : > { %v637_v15 = vsub.f32 1.5, %v636_v13 }
 0x138   : > { %v638_v18 = vmul.f32 %v1102_v9, %v637_v15 }
 0x13a   : > { %v642_v19 = vsel %vm641_vm2, %v1102_v9, %v638_v18 }
 0x13b   : > { %v643_v21 = vmul.f32 %v642_v19, %v631_v16 }
 0x13d   : > { %644 = vst [vmem:[#allocation4] sm:$0x1] %v643_v21  ;;  %v646_v24 = vmul.f32 %v643_v21, %v626_v1 }
 0x13f   : > { %v647_v25 = vsub.f32 %v645_v22, %v646_v24 }
 0x141   : > { %648 = vst [vmem:[#allocation5] sm:$0x1] %v647_v25 }
 0x144   : > { %v1099_v27 = vld [vmem:[#allocation4] ss:$0 sm:$0xff] }
 0x145   : > { %v653_v28 = vmul.f32 %v1099_v27, %v1317_v2  ;;  %v654_v30 = vmul.f32 %v1099_v27, %v1321_v8  ;;  %v655_v31 = vmul.f32 %v1099_v27, %v1325_v14  ;;  %v656_v33 = vmul.f32 %v1099_v27, %v1329_v20 }
 0x146   : > { %v657_v34 = vmul.f32 %v1099_v27, %v1333_v26  ;;  %v658_v36 = vmul.f32 %v1099_v27, %v1337_v32  ;;  %v659_v37 = vmul.f32 %v1099_v27, %v1341_v38  ;;  %v660_v39 = vmul.f32 %v1099_v27, %v1345_v44 }
 0x147   : > { %v661_v42 = vmul.f32 %v1099_v27, %v1319_v5  ;;  %v662_v2 = vmul.f32 %v1099_v27, %v1323_v11  ;;  %v663_v8 = vmul.f32 %v1099_v27, %v1327_v17  ;;  %v664_v14 = vmul.f32 %v1099_v27, %v1331_v23 }
 0x148   : > { %v1413_v40 = vld [vmem:[#allocation5] ss:$0 sm:$0xff]  ;;  %v665_v20 = vmul.f32 %v1099_v27, %v1335_v29  ;;  %v666_v26 = vmul.f32 %v1099_v27, %v1339_v35  ;;  %v1422_v32 = vmul.f32 %v1099_v27, %v1343_v41  ;;  %v1425_v38 = vmul.f32 %v1099_v27, %v1347_v47 }
 0x149   : > { %v673_v44 = vadd.f32 %v1413_v40, %v653_v28  ;;  %v674_v5 = vadd.f32 %v1413_v40, %v654_v30  ;;  %v675_v11 = vadd.f32 %v1413_v40, %v655_v31  ;;  %v676_v17 = vadd.f32 %v1413_v40, %v656_v33 }
 0x14a   : > { %v677_v23 = vadd.f32 %v1413_v40, %v657_v34  ;;  %v678_v29 = vadd.f32 %v1413_v40, %v658_v36  ;;  %v679_v35 = vadd.f32 %v1413_v40, %v659_v37  ;;  %v680_v41 = vadd.f32 %v1413_v40, %v660_v39 }
 0x14b   : > { %vm689_vm3 = vcmp.gt.f32.partialorder %v673_v44, 0.0  ;;  %vm690_vm4 = vcmp.gt.f32.partialorder %v674_v5, 0.0  ;;  %v705_v47 = vmul.f32 0.2, %v673_v44  ;;  %v706_v43 = vmul.f32 0.2, %v674_v5 }
 0x14c   : > { %vm691_vm5 = vcmp.gt.f32.partialorder %v675_v11, 0.0  ;;  %vm692_vm6 = vcmp.gt.f32.partialorder %v676_v17, 0.0  ;;  %v707_v45 = vmul.f32 0.2, %v675_v11  ;;  %v708_v46 = vmul.f32 0.2, %v676_v17 }
 0x14d   : > { %v721_v48 = vsel %vm689_vm3, %v673_v44, %v705_v47  ;;  %v722_v49 = vsel %vm690_vm4, %v674_v5, %v706_v43  ;;  %vm693_vm7 = vcmp.gt.f32.partialorder %v677_v23, 0.0  ;;  %vm694_vm8 = vcmp.gt.f32.partialorder %v678_v29, 0.0 }
 0x14e   : > { %v1014_v50 = vpack.c.bf16 %v722_v49, %v721_v48  ;;  %v723_v51 = vsel %vm691_vm5, %v675_v11, %v707_v45  ;;  %v724_v52 = vsel %vm692_vm6, %v676_v17, %v708_v46  ;;  %v709_v53 = vmul.f32 0.2, %v677_v23 }
 0x14f   : > { %v1019_v54 = vpack.c.bf16 %v724_v52, %v723_v51  ;;  %v710_v55 = vmul.f32 0.2, %v678_v29  ;;  %vm695_vm9 = vcmp.gt.f32.partialorder %v679_v35, 0.0  ;;  %vm696_vm10 = vcmp.gt.f32.partialorder %v680_v41, 0.0 }
 0x150   : > { %1015 = vst [vmem:[%s1482_s4] sm:$0xff] %v1014_v50   ;;  %v725_v56 = vsel %vm693_vm7, %v677_v23, %v709_v53  ;;  %v711_v57 = vmul.f32 0.2, %v679_v35  ;;  %v712_v58 = vmul.f32 0.2, %v680_v41  ;;  %v681_v59 = vadd.f32 %v1413_v40, %v661_v42 }
 0x151   : > { %1051 = vst [vmem:[%s1482_s4 + $0x8] sm:$0xff] %v1019_v54   ;;  %v726_v60 = vsel %vm694_vm8, %v678_v29, %v710_v55  ;;  %v682_v61 = vadd.f32 %v1413_v40, %v662_v2  ;;  %v683_v62 = vadd.f32 %v1413_v40, %v663_v8  ;;  %v684_v63 = vadd.f32 %v1413_v40, %v664_v14 }
 0x152   : > { %v1024_v0 = vpack.c.bf16 %v726_v60, %v725_v56  ;;  %v727_v1 = vsel %vm695_vm9, %v679_v35, %v711_v57  ;;  %v728_v3 = vsel %vm696_vm10, %v680_v41, %v712_v58  ;;  %vm697_vm11 = vcmp.gt.f32.partialorder %v681_v59, 0.0 }
 0x153   : > { %v1029_v4 = vpack.c.bf16 %v728_v3, %v727_v1  ;;  %vm698_vm12 = vcmp.gt.f32.partialorder %v682_v61, 0.0  ;;  %v713_v6 = vmul.f32 0.2, %v681_v59  ;;  %v714_v7 = vmul.f32 0.2, %v682_v61 }
 0x154   : > { %1052 = vst [vmem:[%s1482_s4 + $0x10] sm:$0xff] %v1024_v0   ;;  %vm699_vm13 = vcmp.gt.f32.partialorder %v683_v62, 0.0  ;;  %vm700_vm14 = vcmp.gt.f32.partialorder %v684_v63, 0.0  ;;  %v715_v9 = vmul.f32 0.2, %v683_v62  ;;  %v685_v10 = vadd.f32 %v1413_v40, %v665_v20 }
 0x155   : > { %1053 = vst [vmem:[%s1482_s4 + $0x18] sm:$0xff] %v1029_v4   ;;  %v729_v12 = vsel %vm697_vm11, %v681_v59, %v713_v6  ;;  %v730_v13 = vsel %vm698_vm12, %v682_v61, %v714_v7  ;;  %v716_v15 = vmul.f32 0.2, %v684_v63  ;;  %v686_v16 = vadd.f32 %v1413_v40, %v666_v26 }
 0x156   : > { %v1034_v18 = vpack.c.bf16 %v730_v13, %v729_v12  ;;  %v731_v19 = vsel %vm699_vm13, %v683_v62, %v715_v9  ;;  %vm701_vm15 = vcmp.gt.f32.partialorder %v685_v10, 0.0  ;;  %v717_v21 = vmul.f32 0.2, %v685_v10 }
 0x157   : > { %v732_v22 = vsel %vm700_vm14, %v684_v63, %v716_v15  ;;  %vm702_vm0 = vcmp.gt.f32.partialorder %v686_v16, 0.0  ;;  %v718_v24 = vmul.f32 0.2, %v686_v16  ;;  %v687_v25 = vadd.f32 %v1413_v40, %v1422_v32 }
 0x158   : > { %1054 = vst [vmem:[%s1482_s4 + $0x20] sm:$0xff] %v1034_v18   ;;  %v1039_v27 = vpack.c.bf16 %v732_v22, %v731_v19  ;;  %v733_v28 = vsel %vm701_vm15, %v685_v10, %v717_v21  ;;  %v688_v30 = vadd.f32 %v1413_v40, %v1425_v38 }
 0x159   : > { %v734_v31 = vsel %vm702_vm0, %v686_v16, %v718_v24  ;;  %vm703_vm1 = vcmp.gt.f32.partialorder %v687_v25, 0.0  ;;  %v719_v33 = vmul.f32 0.2, %v687_v25 }
 0x15a   : > { %1055 = vst [vmem:[%s1482_s4 + $0x28] sm:$0xff] %v1039_v27   ;;  %v1044_v34 = vpack.c.bf16 %v734_v31, %v733_v28  ;;  %vm704_vm2 = vcmp.gt.f32.partialorder %v688_v30, 0.0  ;;  %v720_v36 = vmul.f32 0.2, %v688_v30 }
 0x15b   : > { %v735_v37 = vsel %vm703_vm1, %v687_v25, %v719_v33 }
 0x15c   : > { %1056 = vst [vmem:[%s1482_s4 + $0x30] sm:$0xff] %v1044_v34   ;;  %v736_v39 = vsel %vm704_vm2, %v688_v30, %v720_v36 }
 0x15d   : > { %v1049_v42 = vpack.c.bf16 %v736_v39, %v735_v37 }
 0x15f   : > { %1057 = vst [vmem:[%s1482_s4 + $0x38] sm:$0xff] %v1049_v42  }
 0x160 PF: > { %s14_s17 = sadd.s32 1, %s1125_s17   ;;  %s1483_s15 = smov %s1121_s16 }
 0x161   : > { %p11_p6 = scmp.ge.s32.totalorder %s14_s17, 4   ;;  %s1484_s16 = smov %s1486_s18 }
 0x163   :  { %13 = sbr.rel (!%p11_p6) target bundleno = 2 (0x2), region = 82 }

// kernel: critic_forward.7
= control target key start
LH: loop header
LB: loop body
LE: loop exit
PB: predicated region body
PF: predicated region fallthrough
CT: control target
= control target key end

     0   :  { %vm504_vm8 = vcmask 261120   ;;  %vm528_vm9 = vcmask 1024   ;;  %s965_s1 = inlined_call_operand.vmem [shape: bf16[512,128], index: 1, kind: input, shape index: {}]   ;;  %s966_s0 = inlined_call_operand.vmem [shape: bf16[32,512], index: 0, kind: input, shape index: {}]   ;;  %s967_s2 = inlined_call_operand.vmem [shape: f32[1,128], index: 2, kind: input, shape index: {}]   ;;  %s968_s3 = inlined_call_operand.vmem [shape: f32[1,128], index: 3, kind: input, shape index: {}]   ;;  %s969_s4 = inlined_call_operand.vmem [shape: f32[32,128], index: 4, kind: input, shape index: {}]   ;;  %s970_s6 = inlined_call_operand.<no memory space> [shape: f32[1,1], index: 6, kind: input, shape index: {}]   ;;  %s971_s5 = inlined_call_operand.vmem [shape: f32[2,32], index: 5, kind: input, shape index: {}]   ;;  %s972_s7 = inlined_call_operand.vmem [shape: f32[2,1], index: 7, kind: output, shape index: {}]  }
   0x1   :  { %v710_v0 = vld [vmem:[%s965_s1 + $0x38] sm:$0xff]  ;;  %v709_v4 = vld [vmem:[%s965_s1 + $0x30] sm:$0xff]  ;;  %v708_v8 = vld [vmem:[%s965_s1 + $0x28] sm:$0xff] }
   0x2   :  { %v718_v1 = vld [vmem:[%s965_s1 + $0x78] sm:$0xff]  ;;  %332 = vmatpush.bf16.msra.mxu0 %v710_v0  ;;  %v717_v5 = vld [vmem:[%s965_s1 + $0x70] sm:$0xff]  ;;  %v716_v9 = vld [vmem:[%s965_s1 + $0x68] sm:$0xff] }
   0x3   :  { %v726_v2 = vld [vmem:[%s965_s1 + $0xb8] sm:$0xff]  ;;  %351 = vmatpush.bf16.msra.mxu1 %v718_v1  ;;  %v725_v6 = vld [vmem:[%s965_s1 + $0xb0] sm:$0xff]  ;;  %v724_v10 = vld [vmem:[%s965_s1 + $0xa8] sm:$0xff] }
   0x4   :  { %v734_v3 = vld [vmem:[%s965_s1 + $0xf8] sm:$0xff]  ;;  %370 = vmatpush.bf16.msra.mxu2 %v726_v2  ;;  %v733_v7 = vld [vmem:[%s965_s1 + $0xf0] sm:$0xff]  ;;  %v732_v11 = vld [vmem:[%s965_s1 + $0xe8] sm:$0xff] }
   0x5   :  { %389 = vmatpush.bf16.msra.mxu3 %v734_v3  ;;  %v707_v12 = vld [vmem:[%s965_s1 + $0x20] sm:$0xff]  ;;  %v706_v16 = vld [vmem:[%s965_s1 + $0x18] sm:$0xff]  ;;  %v705_v20 = vld [vmem:[%s965_s1 + $0x10] sm:$0xff] }
   0x6   :  { %333 = vmatpush.bf16.msra.mxu0 %v709_v4  ;;  %v715_v13 = vld [vmem:[%s965_s1 + $0x60] sm:$0xff]  ;;  %v714_v17 = vld [vmem:[%s965_s1 + $0x58] sm:$0xff]  ;;  %v713_v21 = vld [vmem:[%s965_s1 + $0x50] sm:$0xff] }
   0x7   :  { %352 = vmatpush.bf16.msra.mxu1 %v717_v5  ;;  %v723_v14 = vld [vmem:[%s965_s1 + $0xa0] sm:$0xff]  ;;  %v722_v18 = vld [vmem:[%s965_s1 + $0x98] sm:$0xff]  ;;  %v721_v22 = vld [vmem:[%s965_s1 + $0x90] sm:$0xff] }
   0x8   :  { %371 = vmatpush.bf16.msra.mxu2 %v725_v6  ;;  %v731_v15 = vld [vmem:[%s965_s1 + $0xe0] sm:$0xff]  ;;  %v730_v19 = vld [vmem:[%s965_s1 + $0xd8] sm:$0xff]  ;;  %v729_v23 = vld [vmem:[%s965_s1 + $0xd0] sm:$0xff]  ;;  %v741_v6 = vmov 32.0  }
   0x9   :  { %390 = vmatpush.bf16.msra.mxu3 %v733_v7  ;;  %v704_v24 = vld [vmem:[%s965_s1 + $0x8] sm:$0xff]  ;;  %v703_v28 = vld [vmem:[%s965_s1] sm:$0xff]  ;;  %v697_v33 = vld [vmem:[%s966_s0 + $0xc] sm:$0xf0]  ;;  %737 = vrcp.f32 %v741_v6 }
   0xa   :  { %334 = vmatpush.bf16.msra.mxu0 %v708_v8  ;;  %v712_v25 = vld [vmem:[%s965_s1 + $0x48] sm:$0xff]  ;;  %v711_v29 = vld [vmem:[%s965_s1 + $0x40] sm:$0xff]  ;;  %v538_v35 = vld [vmem:[%s966_s0 + $0x10] sm:$0xf0] }
   0xb   :  { %353 = vmatpush.bf16.msra.mxu1 %v716_v9  ;;  %v720_v26 = vld [vmem:[%s965_s1 + $0x88] sm:$0xff]  ;;  %v719_v30 = vld [vmem:[%s965_s1 + $0x80] sm:$0xff]  ;;  %v698_v37 = vld [vmem:[%s966_s0 + $0x14] sm:$0xf0] }
   0xc   :  { %372 = vmatpush.bf16.msra.mxu2 %v724_v10  ;;  %v728_v27 = vld [vmem:[%s965_s1 + $0xc8] sm:$0xff]  ;;  %v727_v31 = vld [vmem:[%s965_s1 + $0xc0] sm:$0xff]  ;;  %v546_v39 = vld [vmem:[%s966_s0 + $0x18] sm:$0xf0] }
   0xd   :  { %391 = vmatpush.bf16.msra.mxu3 %v732_v11  ;;  %v536_v32 = vld [vmem:[%s966_s0] sm:$0xf]  ;;  %v695_v34 = vld [vmem:[%s966_s0 + $0x4] sm:$0xf]  ;;  %v544_v36 = vld [vmem:[%s966_s0 + $0x8] sm:$0xf] }
   0xe   :  { %335 = vmatpush.bf16.msra.mxu0 %v707_v12  ;;  %v696_v38 = vld [vmem:[%s966_s0 + $0xc] sm:$0xf]  ;;  %v537_v40 = vor.u32 %v697_v33, %v536_v32  ;;  %v541_v41 = vor.u32 %v695_v34, %v538_v35  ;;  %v545_v42 = vor.u32 %v698_v37, %v544_v36  ;;  %v552_v44 = vld [vmem:[%s966_s0 + $0x20] sm:$0xf]  ;;  %v701_v45 = vld [vmem:[%s966_s0 + $0x2c] sm:$0xf0] }
   0xf   :  { %354 = vmatpush.bf16.msra.mxu1 %v715_v13  ;;  %v549_v43 = vor.u32 %v696_v38, %v546_v39  ;;  %v699_v46 = vld [vmem:[%s966_s0 + $0x24] sm:$0xf]  ;;  %v554_v47 = vld [vmem:[%s966_s0 + $0x30] sm:$0xf0]  ;;  %v560_v48 = vld [vmem:[%s966_s0 + $0x28] sm:$0xf]  ;;  %v553_v52 = vor.u32 %v701_v45, %v552_v44 }
  0x10   :  { %373 = vmatpush.bf16.msra.mxu2 %v723_v14  ;;  %v702_v49 = vld [vmem:[%s966_s0 + $0x34] sm:$0xf0]  ;;  %v700_v50 = vld [vmem:[%s966_s0 + $0x2c] sm:$0xf]  ;;  %v562_v51 = vld [vmem:[%s966_s0 + $0x38] sm:$0xf0]  ;;  %v557_v53 = vor.u32 %v699_v46, %v554_v47  ;;  %v738_v14 = vpop.eup %737 }
  0x11   :  { %392 = vmatpush.bf16.msra.mxu3 %v731_v15  ;;  %v561_v54 = vor.u32 %v702_v49, %v560_v48  ;;  %v565_v55 = vor.u32 %v700_v50, %v562_v51  ;;  %vm422_vm0 = vweird.f32 %v738_v14 }
  0x12   :  { %336 = vmatpush.bf16.msra.mxu0 %v706_v16 }
  0x13   :  { %355 = vmatpush.bf16.msra.mxu1 %v714_v17 }
  0x14   :  { %374 = vmatpush.bf16.msra.mxu2 %v722_v18 }
  0x15   :  { %393 = vmatpush.bf16.msra.mxu3 %v730_v19 }
  0x16   :  { %337 = vmatpush.bf16.msra.mxu0 %v705_v20  ;;  %v418_v20 = vmul.f32 32.0, %v738_v14 }
  0x17   :  { %356 = vmatpush.bf16.msra.mxu1 %v713_v21 }
  0x18   :  { %375 = vmatpush.bf16.msra.mxu2 %v721_v22 }
  0x19   :  { %394 = vmatpush.bf16.msra.mxu3 %v729_v23 }
  0x1a   :  { %338 = vmatpush.bf16.msra.mxu0 %v704_v24 }
  0x1b   :  { %357 = vmatpush.bf16.msra.mxu1 %v712_v25 }
  0x1c   :  { %376 = vmatpush.bf16.msra.mxu2 %v720_v26 }
  0x1d   :  { %395 = vmatpush.bf16.msra.mxu3 %v728_v27 }
  0x1e   :  { %339 = vmatpush.bf16.msra.mxu0 %v703_v28 }
  0x1f   :  { %358 = vmatpush.bf16.msra.mxu1 %v711_v29  ;;  %v419_v29 = vsub.f32 1.0, %v418_v20 }
  0x20   :  { %377 = vmatpush.bf16.msra.mxu2 %v719_v30 }
  0x21   :  { %396 = vmatpush.bf16.msra.mxu3 %v727_v31  ;;  %340 = vmatmul.bf16.vlgmr.msra.gmra.mxu0 %v537_v40  ;;  %v420_v35 = vmul.f32 %v738_v14, %v419_v29 }
  0x22   :  { %359 = vmatmul.bf16.vlgmr.msra.gmra.mxu1 %v541_v41 }
  0x23   :  { %378 = vmatmul.bf16.vlgmr.msra.gmra.mxu2 %v545_v42  ;;  %v421_v40 = vadd.f32 %v738_v14, %v420_v35 }
  0x24   :  { %397 = vmatmul.bf16.vlgmr.msra.gmra.mxu3 %v549_v43 }
  0x25   :  { %v423_v45 = vsel %vm422_vm0, %v738_v14, %v421_v40 }
  0x31   :  { %345 = vmatmul.bf16.gmra.mxu0 %v553_v52 }
  0x32   :  { %364 = vmatmul.bf16.gmra.mxu1 %v557_v53 }
  0x33   :  { %383 = vmatmul.bf16.gmra.mxu2 %v561_v54 }
  0x34   :  { %402 = vmatmul.bf16.gmra.mxu3 %v565_v55 }
  0x9e   :  { %v341_v56 = vpop.f32.mrf.mxu0 }
  0x9f   :  { %v360_v57 = vpop.f32.mrf.mxu1 }
  0xa0   :  { %v361_v2 = vadd.f32 %v360_v57, %v341_v56 }
  0xa6   :  { %v379_v58 = vpop.f32.mrf.mxu2  ;;  %v343_v60 = vpop.f32.mrf.mxu0 }
  0xa7   :  { %v398_v59 = vpop.f32.mrf.mxu3  ;;  %v362_v61 = vpop.f32.mrf.mxu1  ;;  %v380_v9 = vadd.f32 %v379_v58, %v361_v2 }
  0xa8   :  { %v363_v3 = vadd.f32 %v362_v61, %v343_v60 }
  0xa9   :  { %v928_v15 = vadd.f32 %v398_v59, %v380_v9  ;;  %v441_v59 = vld [vmem:[%s967_s2] sm:$0x1] }
  0xab   :  { %v425_v21 = vmul.f32 %v928_v15, %v928_v15 }
  0xae   :  { %v381_v62 = vpop.f32.mrf.mxu2  ;;  %v346_v0 = vpop.f32.mrf.mxu0 }
  0xaf   :  { %v400_v63 = vpop.f32.mrf.mxu3  ;;  %v365_v1 = vpop.f32.mrf.mxu1  ;;  %v382_v5 = vadd.f32 %v381_v62, %v363_v3 }
  0xb0   :  { %v366_v4 = vadd.f32 %v365_v1, %v346_v0 }
  0xb1   :  { %v926_v11 = vadd.f32 %v400_v63, %v382_v5  ;;  %v454_v63 = vld [vmem:[%s968_s3] sm:$0x1] }
  0xb3   :  { %v426_v17 = vmul.f32 %v926_v11, %v926_v11  ;;  %v408_v22 = vadd.f32 %v926_v11, %v928_v15 }
  0xb5   :  { %v429_v26 = vadd.f32 %v426_v17, %v425_v21 }
  0xb6   :  { %v384_v7 = vpop.f32.mrf.mxu2  ;;  %v348_v12 = vpop.f32.mrf.mxu0 }
  0xb7   :  { %v403_v8 = vpop.f32.mrf.mxu3  ;;  %v385_v10 = vadd.f32 %v384_v7, %v366_v4  ;;  %v367_v13 = vpop.f32.mrf.mxu1 }
  0xb8   :  { %v368_v18 = vadd.f32 %v367_v13, %v348_v12  ;;  %v484_v12 = vld [vmem:[%s969_s4 + $0x8] sm:$0xff] }
  0xb9   :  { %v404_v16 = vadd.f32 %v403_v8, %v385_v10  ;;  %v486_v10 = vld [vmem:[%s969_s4 + $0x18] sm:$0xff] }
  0xbb   :  { %v427_v23 = vmul.f32 %v404_v16, %v404_v16  ;;  %v409_v27 = vadd.f32 %v408_v22, %v404_v16 }
  0xbd   :  { %v430_v30 = vadd.f32 %v429_v26, %v427_v23  ;;  %v485_v23 = vld [vmem:[%s969_s4 + $0x10] sm:$0xff] }
  0xbe   :  { %v386_v19 = vpop.f32.mrf.mxu2 }
  0xbf   :  { %v387_v24 = vadd.f32 %v386_v19, %v368_v18  ;;  %v405_v25 = vpop.f32.mrf.mxu3 }
  0xc1   :  { %v406_v28 = vadd.f32 %v405_v25, %v387_v24  ;;  %v483_v25 = vld [vmem:[%s969_s4] sm:$0xff] }
  0xc3   :  { %v410_v31 = vadd.f32 %v409_v27, %v406_v28  ;;  %v428_v32 = vmul.f32 %v406_v28, %v406_v28 }
  0xc5   :  { %v411_v33 = vrot.slane %v410_v31, 4  ;;  %v431_v34 = vadd.f32 %v430_v30, %v428_v32  ;;  %v499_v32 = vld [vmem:[%s971_s5] sm:$0x3] }
  0xc7   :  { %v412_v36 = vadd.f32 %v411_v33, %v410_v31  ;;  %v432_v37 = vrot.slane %v431_v34, 4 }
  0xc9   :  { %v413_v38 = vrot.slane %v412_v36, 2  ;;  %v433_v39 = vadd.f32 %v432_v37, %v431_v34 }
  0xcb   :  { %v414_v41 = vadd.f32 %v413_v38, %v412_v36  ;;  %v434_v42 = vrot.slane %v433_v39, 2 }
  0xcd   :  { %v415_v43 = vrot.slane %v414_v41, 1  ;;  %v435_v44 = vadd.f32 %v434_v42, %v433_v39 }
  0xcf   :  { %v416_v46 = vadd.f32 %v415_v43, %v414_v41  ;;  %v436_v47 = vrot.slane %v435_v44, 1 }
  0xd1   :  { %v424_v48 = vmul.f32 %v423_v45, %v416_v46  ;;  %v437_v49 = vadd.f32 %v436_v47, %v435_v44 }
  0xd3   :  { %v438_v50 = vmul.f32 %v437_v49, %v423_v45  ;;  %v439_v51 = vmul.f32 %v424_v48, %v424_v48 }
  0xd5   :  { %v440_v52 = vsub.f32 %v438_v50, %v439_v51 }
  0xd7   :  { %v442_v53 = vadd.f32 1e-05, %v440_v52 }
  0xd9   :  { %739 = vrsqrt.f32 %v442_v53  ;;  %vm449_vm2 = vweird.f32 %v442_v53 }
  0xdf   :  { %v740_v54 = vpop.eup %739 }
  0xe0   :  { %v444_v55 = vmul.f32 %v740_v54, %v442_v53  ;;  %vm450_vm1 = vweird.f32 %v740_v54 }
  0xe1   :  { %vm451_vm3 = vmor %vm449_vm2, %vm450_vm1 }
  0xe2   :  { %v445_v56 = vmul.f32 %v740_v54, %v444_v55 }
  0xe4   :  { %v446_v57 = vmul.f32 0.5, %v445_v56 }
  0xe6   :  { %v447_v58 = vsub.f32 1.5, %v446_v57 }
  0xe8   :  { %v448_v60 = vmul.f32 %v740_v54, %v447_v58 }
  0xea   :  { %v452_v61 = vsel %vm451_vm3, %v740_v54, %v448_v60 }
  0xeb   :  { %v453_v62 = vmul.f32 %v452_v61, %v441_v59 }
  0xed   :  { %v455_v0 = vmul.f32 %v453_v62, %v424_v48  ;;  %v458_v1 = vperm.slane %v453_v62, 0 }
  0xef   :  { %v456_v2 = vsub.f32 %v454_v63, %v455_v0  ;;  %v463_v3 = vmul.f32 %v458_v1, %v406_v28  ;;  %v461_v5 = vmul.f32 %v458_v1, %v926_v11  ;;  %v462_v6 = vmul.f32 %v458_v1, %v404_v16 }
  0xf0   :  { %v460_v7 = vmul.f32 %v458_v1, %v928_v15  ;;  %v12_v28 = vstv %s970_s6 }
  0xf1   :  { %v465_v4 = vperm.slane %v456_v2, 0  ;;  %13 = vst [vmem:[#allocation2] sm:$0x1] %v12_v28 }
  0xf3   :  { %v470_v8 = vadd.f32 %v465_v4, %v463_v3  ;;  %v468_v9 = vadd.f32 %v465_v4, %v461_v5  ;;  %v469_v13 = vadd.f32 %v465_v4, %v462_v6  ;;  %v467_v14 = vadd.f32 %v465_v4, %v460_v7 }
  0xf5   :  { %vm474_vm4 = vcmp.gt.f32.partialorder %v470_v8, 0.0  ;;  %v478_v17 = vmul.f32 0.2, %v470_v8  ;;  %vm472_vm5 = vcmp.gt.f32.partialorder %v468_v9, 0.0  ;;  %v476_v18 = vmul.f32 0.2, %v468_v9 }
  0xf6   :  { %v477_v20 = vmul.f32 0.2, %v469_v13  ;;  %v475_v21 = vmul.f32 0.2, %v467_v14  ;;  %vm473_vm6 = vcmp.gt.f32.partialorder %v469_v13, 0.0  ;;  %vm471_vm7 = vcmp.gt.f32.partialorder %v467_v14, 0.0 }
  0xf7   :  { %v482_v11 = vsel %vm474_vm4, %v470_v8, %v478_v17  ;;  %v480_v16 = vsel %vm472_vm5, %v468_v9, %v476_v18 }
  0xf8   :  { %v490_v19 = vmul.f32 %v486_v10, %v482_v11  ;;  %v488_v15 = vmul.f32 %v484_v12, %v480_v16  ;;  %v481_v22 = vsel %vm473_vm6, %v469_v13, %v477_v20  ;;  %v479_v24 = vsel %vm471_vm7, %v467_v14, %v475_v21  ;;  %v736_v34 = vld [vmem:[#allocation2] ss:$0 sm:$0xff] }
  0xf9   :  { %v489_v26 = vmul.f32 %v485_v23, %v481_v22  ;;  %v487_v27 = vmul.f32 %v483_v25, %v479_v24 }
  0xfa   :  { %497 = vadd.xlane.f32.xlu0 %v490_v19  ;;  %493 = vadd.xlane.f32.xlu1 %v488_v15 }
 0x102   :  { %495 = vadd.xlane.f32.xlu0 %v489_v26  ;;  %491 = vadd.xlane.f32.xlu1 %v487_v27 }
 0x16d   :  { %v498_v29 = vpop.xlane.xlu0 %497  ;;  %v494_v30 = vpop.xlane.xlu1 %493 }
 0x16e   :  { %520 = vmatpush.msrb.mxu0 %v498_v29 }
 0x175   :  { %v496_v31 = vpop.xlane.xlu0 %495  ;;  %v492_v33 = vpop.xlane.xlu1 %491 }
 0x176   :  { %521 = vmatpush.msrb.mxu0 %v496_v31 }
 0x178   :  { %522 = vmatpush.msrb.mxu0 %v494_v30 }
 0x17a   :  { %523 = vmatpush.msrb.mxu0 %v492_v33 }
 0x17b   :  { %694 = vmatmul.msk.f32.vlgmr.msrb.gmra.mxu0 %vm504_vm8, %v499_v32 }
 0x1f8   :  { %v525_v35 = vpop.f32.mrf.mxu0 }
 0x1f9   :  { %v526_v36 = vadd.f32 %v736_v34, %v525_v35 }
 0x1fb   :  { %529 = vst.msk [vmem:[%s972_s7] sm:$0x3] %vm528_vm9, %v526_v36 }

</bundles_post_ra>
